<compile_context>
chip_gen: v6e
topology: v6e:2x2x1
jax: 0.10.0
libtpu: 0.0.40
codegen_flags: <defaults>
</compile_context>

<pallas_src>
import math
import jax
import jax.numpy as jnp
from jax.experimental import pallas as pl
from jax.experimental.pallas import tpu as pltpu

# Full-f32 matmuls everywhere (kernel trace and reference) so the comparison is tight.
jax.config.update("jax_default_matmul_precision", "highest")

# ---- model dimensions (small, but consistent with the module) ----
B = 2           # batch
S = 8           # sequence length
D = 32          # d_model ("size")
NUM_HEADS = 4
DK = D // NUM_HEADS
DFF = 64        # feed-forward hidden
BS = B * S
HBS = NUM_HEADS * BS          # stacked-head row count (64)
EPS = 1e-6
NEG_INF = -1e9
SCALE = 1.0 / math.sqrt(DK)

# ---- constant/parameter slab layout (row offsets, each block starts on a multiple of 8) ----
LN_OFF = 0        # 4 rows used (ln1_a, ln1_b, ln2_a, ln2_b); 8 reserved
QKV_OFF = 8       # (D, 3D) fused Wq|Wk|Wv + 1 bias row -> 33 rows; 40 reserved
WO_OFF = 48       # (D, D) + bias                        -> 33 rows; 40 reserved
W1_OFF = 88       # (D, DFF) + bias                      -> 33 rows; 40 reserved
W2_OFF = 128      # (DFF, D) + bias                      -> 65 rows; 72 reserved
MASK_OFF = 200    # (HBS, HBS) static structural mask bias -> 64 rows
SLAB_ROWS = MASK_OFF + HBS    # 264
SLAB_COLS = 128               # lane-dense slab


def _layer_norm(v, a, b):
    """PyTorch-style LayerNorm: a*(x-mean)/(std+eps)+b, std unbiased (N-1). Exact math."""
    mean = jnp.mean(v, axis=-1, keepdims=True)
    var = jnp.sum((v - mean) ** 2, axis=-1, keepdims=True) * (1.0 / (D - 1))
    return a * (v - mean) / (jnp.sqrt(var) + EPS) + b


def encoder_layer_kernel(x_ref, keep_ref, w_ref, o_ref):
    x = x_ref[...]                                            # (BS, D)

    # ---- slices into the pre-packed constant slab (sublane block offsets all %8==0) ----
    ln1_a = w_ref[LN_OFF + 0:LN_OFF + 1, 0:D]
    ln1_b = w_ref[LN_OFF + 1:LN_OFF + 2, 0:D]
    ln2_a = w_ref[LN_OFF + 2:LN_OFF + 3, 0:D]
    ln2_b = w_ref[LN_OFF + 3:LN_OFF + 4, 0:D]
    wqkv = w_ref[QKV_OFF:QKV_OFF + D, 0:3 * D]                # (D, 3D)  Wq|Wk|Wv fused
    bqkv = w_ref[QKV_OFF + D:QKV_OFF + D + 1, 0:3 * D]        # (1, 3D)
    wo = w_ref[WO_OFF:WO_OFF + D, 0:D]
    bo = w_ref[WO_OFF + D:WO_OFF + D + 1, 0:D]
    w1 = w_ref[W1_OFF:W1_OFF + D, 0:DFF]
    b1 = w_ref[W1_OFF + D:W1_OFF + D + 1, 0:DFF]
    w2 = w_ref[W2_OFF:W2_OFF + DFF, 0:D]
    b2 = w_ref[W2_OFF + DFF:W2_OFF + DFF + 1, 0:D]
    struct_bias = w_ref[MASK_OFF:MASK_OFF + HBS, 0:HBS]       # (HBS, HBS): 0 / -1e9

    # ---- additive key-padding bias for the stacked-head layout ----
    keep = keep_ref[...]                                      # (1, BS), 1.0 = attend
    keep_stk = jnp.concatenate([keep] * NUM_HEADS, axis=1)    # (1, HBS) = keep[k % BS]
    keep_bias = jnp.where(keep_stk > 0.0, 0.0, NEG_INF)       # (1, HBS)

    # ---------------- sublayer 0: pre-norm + multi-head self-attention ----------------
    xn = _layer_norm(x, ln1_a, ln1_b)
    qkv = jnp.dot(xn, wqkv, preferred_element_type=jnp.float32) + bqkv    # (BS, 3D)

    # Stack heads along sublanes: row h*BS + t  <->  (head h, token t).
    q_stk = jnp.concatenate(
        [qkv[:, h * DK:(h + 1) * DK] for h in range(NUM_HEADS)], axis=0)              # (HBS, DK)
    k_stk = jnp.concatenate(
        [qkv[:, D + h * DK:D + (h + 1) * DK] for h in range(NUM_HEADS)], axis=0)      # (HBS, DK)
    v_stk = jnp.concatenate(
        [qkv[:, 2 * D + h * DK:2 * D + (h + 1) * DK] for h in range(NUM_HEADS)], axis=0)

    sc = jnp.einsum("qd,kd->qk", q_stk, k_stk,
                    preferred_element_type=jnp.float32)       # (HBS, HBS)
    sc = sc * SCALE + struct_bias + keep_bias                 # additive mask, no where()
    m = jnp.max(sc, axis=-1, keepdims=True)
    e = jnp.exp(sc - m)                                       # masked entries -> exactly 0
    p = e / jnp.sum(e, axis=-1, keepdims=True)                # exact softmax
    ctx_stk = jnp.dot(p, v_stk, preferred_element_type=jnp.float32)       # (HBS, DK)

    # Un-stack heads back into lanes: (BS, D), head h in columns h*DK:(h+1)*DK.
    ctx = jnp.concatenate(
        [ctx_stk[h * BS:(h + 1) * BS, :] for h in range(NUM_HEADS)], axis=1)

    x1 = x + jnp.dot(ctx, wo, preferred_element_type=jnp.float32) + bo    # dropout = id

    # ---------------- sublayer 1: pre-norm + position-wise FFN ----------------
    xn2 = _layer_norm(x1, ln2_a, ln2_b)
    hid = jnp.maximum(jnp.dot(xn2, w1, preferred_element_type=jnp.float32) + b1, 0.0)
    o_ref[...] = x1 + jnp.dot(hid, w2, preferred_element_type=jnp.float32) + b2


def pack_params(p):
    """One-time packing of all parameters + the static structural mask bias into a single
    lane-aligned (SLAB_ROWS, 128) f32 slab.  Done once at setup, NOT per call."""
    slab = jnp.zeros((SLAB_ROWS, SLAB_COLS), jnp.float32)

    def put(s, r, a):
        return s.at[r:r + a.shape[0], 0:a.shape[1]].set(a)

    slab = put(slab, LN_OFF + 0, p["ln1_a"])
    slab = put(slab, LN_OFF + 1, p["ln1_b"])
    slab = put(slab, LN_OFF + 2, p["ln2_a"])
    slab = put(slab, LN_OFF + 3, p["ln2_b"])
    slab = put(slab, QKV_OFF, jnp.concatenate([p["wq"], p["wk"], p["wv"]], axis=1))
    slab = put(slab, QKV_OFF + D, jnp.concatenate([p["bq"], p["bk"], p["bv"]], axis=1))
    slab = put(slab, WO_OFF, p["wo"])
    slab = put(slab, WO_OFF + D, p["bo"])
    slab = put(slab, W1_OFF, p["w1"])
    slab = put(slab, W1_OFF + D, p["b1"])
    slab = put(slab, W2_OFF, p["w2"])
    slab = put(slab, W2_OFF + DFF, p["b2"])

    # Static structural mask bias for the stacked-head scores:
    # 0 where (same head block AND same batch), else -1e9.  Key padding added at runtime.
    ids = jnp.arange(HBS, dtype=jnp.int32)
    head = ids // BS
    batch = (ids % BS) // S
    same = (head[:, None] == head[None, :]) & (batch[:, None] == batch[None, :])
    slab = put(slab, MASK_OFF, jnp.where(same, 0.0, NEG_INF).astype(jnp.float32))
    return slab


def encoder_layer(x, mask, param_slab):
    """x: (B,S,D) f32; mask: (B,1,S) f32 (1 = attend); param_slab: output of pack_params."""
    x2d = x.reshape(BS, D)          # layout-preserving reshape (free)
    keep = mask.reshape(1, BS)      # key-padding keep row, layout-preserving

    full = lambda shape: pl.BlockSpec(shape, lambda i: (0, 0))
    out2d = pl.pallas_call(
        encoder_layer_kernel,
        out_shape=jax.ShapeDtypeStruct((BS, D), jnp.float32),
        grid_spec=pltpu.PrefetchScalarGridSpec(
            num_scalar_prefetch=0,
            grid=(1,),   # single collapsed step on ALL generations (latency-bound problem)
            in_specs=[full((BS, D)), full((1, BS)), full((SLAB_ROWS, SLAB_COLS))],
            out_specs=full((BS, D)),
        ),
        compiler_params=pltpu.CompilerParams(dimension_semantics=("arbitrary",)),
    )(x2d, keep, param_slab)
    return out2d.reshape(B, S, D)


def reference(x, mask, p):
    """Pure-JAX reference mirroring the PyTorch module exactly (inference / no dropout)."""
    def ln(v, a, b):
        mean = jnp.mean(v, axis=-1, keepdims=True)
        var = jnp.sum((v - mean) ** 2, axis=-1, keepdims=True) * (1.0 / (D - 1))
        return a * (v - mean) / (jnp.sqrt(var) + EPS) + b

    xn = ln(x, p["ln1_a"], p["ln1_b"])
    q = xn @ p["wq"] + p["bq"]
    k = xn @ p["wk"] + p["bk"]
    v = xn @ p["wv"] + p["bv"]
    qh = q.reshape(B, S, NUM_HEADS, DK).transpose(0, 2, 1, 3)
    kh = k.reshape(B, S, NUM_HEADS, DK).transpose(0, 2, 1, 3)
    vh = v.reshape(B, S, NUM_HEADS, DK).transpose(0, 2, 1, 3)
    scores = jnp.einsum("bhqd,bhkd->bhqk", qh, kh) / math.sqrt(DK)
    scores = jnp.where(mask[:, None, :, :] > 0, scores, NEG_INF)
    pr = jax.nn.softmax(scores, axis=-1)
    attn = jnp.einsum("bhqk,bhkd->bhqd", pr, vh).transpose(0, 2, 1, 3).reshape(B, S, D)
    x1 = x + (attn @ p["wo"] + p["bo"])
    xn2 = ln(x1, p["ln2_a"], p["ln2_b"])
    ff = jnp.maximum(xn2 @ p["w1"] + p["b1"], 0.0) @ p["w2"] + p["b2"]
    return x1 + ff


def make_params(key):
    ks = jax.random.split(key, 16)

    def w(k, shape, fan_in):
        return jax.random.normal(k, shape, jnp.float32) / math.sqrt(fan_in)

    def bias(k, shape):
        return 0.1 * jax.random.normal(k, shape, jnp.float32)

    return {
        "ln1_a": 1.0 + 0.1 * jax.random.normal(ks[0], (1, D), jnp.float32),
        "ln1_b": bias(ks[1], (1, D)),
        "ln2_a": 1.0 + 0.1 * jax.random.normal(ks[2], (1, D), jnp.float32),
        "ln2_b": bias(ks[3], (1, D)),
        "wq": w(ks[4], (D, D), D), "bq": bias(ks[5], (1, D)),
        "wk": w(ks[6], (D, D), D), "bk": bias(ks[7], (1, D)),
        "wv": w(ks[8], (D, D), D), "bv": bias(ks[9], (1, D)),
        "wo": w(ks[10], (D, D), D), "bo": bias(ks[11], (1, D)),
        "w1": w(ks[12], (D, DFF), D), "b1": bias(ks[13], (1, DFF)),
        "w2": w(ks[14], (DFF, D), DFF), "b2": bias(ks[15], (1, D)),
    }


if __name__ == "__main__":
    key = jax.random.PRNGKey(0)
    kx, kp = jax.random.split(key)
    x = jax.random.normal(kx, (B, S, D), jnp.float32)
    # padding mask: batch 0 attends to all 8 positions, batch 1 to the first 6
    lengths = jnp.array([8, 6], jnp.int32)
    mask = (jnp.arange(S)[None, :] < lengths[:, None]).astype(jnp.float32)[:, None, :]

    params = make_params(kp)
    param_slab = jax.block_until_ready(pack_params(params))   # packed ONCE, off the call path

    out = encoder_layer(x, mask, param_slab)
    out = jax.block_until_ready(out)

    ref = reference(x, mask, params)
    assert out.shape == (B, S, D)
    # Kernel uses exact (non-approx) math; tolerance only covers f32 matmul accumulation-
    # order / MXU pass differences between the Mosaic kernel and the XLA reference.
    assert jnp.allclose(out, ref, rtol=5e-3, atol=5e-3), "Pallas output mismatch vs reference"
    print("KERNEL_OK")
</pallas_src>

<mosaic_0001>
module attributes {stable_mosaic.version = 11 : i64} {
  func.func @encoder_layer_kernel(%arg0: i32, %arg1: memref<16x32xf32, #tpu.memory_space<vmem>>, %arg2: memref<1x16xf32, #tpu.memory_space<vmem>>, %arg3: memref<264x128xf32, #tpu.memory_space<vmem>>, %arg4: memref<16x32xf32, #tpu.memory_space<vmem>>) attributes {dimension_semantics = [#tpu.dimension_semantics<arbitrary>], iteration_bounds = array<i64: 1>, scalar_prefetch = 0 : i64, scratch_operands = 0 : i64, tpu.core_type = #tpu.core_type<tc>, window_params = [{pipeline_mode = #tpu.pipeline_mode<synchronous>, transform_indices = @transform_0, window_bounds = array<i64: 16, 32>}, {pipeline_mode = #tpu.pipeline_mode<synchronous>, transform_indices = @transform_1, window_bounds = array<i64: 1, 16>}, {pipeline_mode = #tpu.pipeline_mode<synchronous>, transform_indices = @transform_2, window_bounds = array<i64: 264, 128>}, {pipeline_mode = #tpu.pipeline_mode<synchronous>, transform_indices = @transform_3, window_bounds = array<i64: 16, 32>}]} {
    %c0 = arith.constant 0 : index
    %c0_0 = arith.constant 0 : index
    %0 = vector.load %arg1[%c0, %c0_0] : memref<16x32xf32, #tpu.memory_space<vmem>>, vector<16x32xf32>
    %c0_1 = arith.constant 0 : index
    %c0_2 = arith.constant 0 : index
    %1 = vector.load %arg3[%c0_1, %c0_2] : memref<264x128xf32, #tpu.memory_space<vmem>>, vector<1x32xf32>
    %c1 = arith.constant 1 : index
    %c0_3 = arith.constant 0 : index
    %2 = vector.load %arg3[%c1, %c0_3] : memref<264x128xf32, #tpu.memory_space<vmem>>, vector<1x32xf32>
    %c2 = arith.constant 2 : index
    %c0_4 = arith.constant 0 : index
    %3 = vector.load %arg3[%c2, %c0_4] : memref<264x128xf32, #tpu.memory_space<vmem>>, vector<1x32xf32>
    %c3 = arith.constant 3 : index
    %c0_5 = arith.constant 0 : index
    %4 = vector.load %arg3[%c3, %c0_5] : memref<264x128xf32, #tpu.memory_space<vmem>>, vector<1x32xf32>
    %c8 = arith.constant 8 : index
    %c0_6 = arith.constant 0 : index
    %5 = vector.load %arg3[%c8, %c0_6] : memref<264x128xf32, #tpu.memory_space<vmem>>, vector<32x96xf32>
    %c40 = arith.constant 40 : index
    %c0_7 = arith.constant 0 : index
    %6 = vector.load %arg3[%c40, %c0_7] : memref<264x128xf32, #tpu.memory_space<vmem>>, vector<1x96xf32>
    %c48 = arith.constant 48 : index
    %c0_8 = arith.constant 0 : index
    %7 = vector.load %arg3[%c48, %c0_8] : memref<264x128xf32, #tpu.memory_space<vmem>>, vector<32x32xf32>
    %c80 = arith.constant 80 : index
    %c0_9 = arith.constant 0 : index
    %8 = vector.load %arg3[%c80, %c0_9] : memref<264x128xf32, #tpu.memory_space<vmem>>, vector<1x32xf32>
    %c88 = arith.constant 88 : index
    %c0_10 = arith.constant 0 : index
    %9 = vector.load %arg3[%c88, %c0_10] : memref<264x128xf32, #tpu.memory_space<vmem>>, vector<32x64xf32>
    %c120 = arith.constant 120 : index
    %c0_11 = arith.constant 0 : index
    %10 = vector.load %arg3[%c120, %c0_11] : memref<264x128xf32, #tpu.memory_space<vmem>>, vector<1x64xf32>
    %c128 = arith.constant 128 : index
    %c0_12 = arith.constant 0 : index
    %11 = vector.load %arg3[%c128, %c0_12] : memref<264x128xf32, #tpu.memory_space<vmem>>, vector<64x32xf32>
    %c192 = arith.constant 192 : index
    %c0_13 = arith.constant 0 : index
    %12 = vector.load %arg3[%c192, %c0_13] : memref<264x128xf32, #tpu.memory_space<vmem>>, vector<1x32xf32>
    %c200 = arith.constant 200 : index
    %c0_14 = arith.constant 0 : index
    %13 = vector.load %arg3[%c200, %c0_14] : memref<264x128xf32, #tpu.memory_space<vmem>>, vector<64x64xf32>
    %c0_15 = arith.constant 0 : index
    %c0_16 = arith.constant 0 : index
    %14 = vector.load %arg2[%c0_15, %c0_16] : memref<1x16xf32, #tpu.memory_space<vmem>>, vector<1x16xf32>
    %15 = tpu.concatenate %14, %14, %14, %14 in 1 : vector<1x16xf32>, vector<1x16xf32>, vector<1x16xf32>, vector<1x16xf32> -> vector<1x64xf32>
    %cst = arith.constant 0.000000e+00 : f32
    %16 = vector.broadcast %cst : f32 to vector<1x64xf32>
    %17 = arith.cmpf ogt, %15, %16 : vector<1x64xf32>
    %cst_17 = arith.constant 0.000000e+00 : f32
    %cst_18 = arith.constant -1.000000e+09 : f32
    %18 = vector.broadcast %cst_17 : f32 to vector<1x64xf32>
    %19 = vector.broadcast %cst_18 : f32 to vector<1x64xf32>
    %20 = arith.select %17, %18, %19 : vector<1x64xi1>, vector<1x64xf32>
    %cst_19 = arith.constant dense<0.000000e+00> : vector<16xf32>
    %21 = vector.multi_reduction <add>, %0, %cst_19 [1] : vector<16x32xf32> to vector<16xf32>
    %22 = vector.shape_cast %21 : vector<16xf32> to vector<16x1xf32>
    %cst_20 = arith.constant 3.200000e+01 : f32
    %23 = vector.broadcast %cst_20 : f32 to vector<16x1xf32>
    %24 = arith.divf %22, %23 : vector<16x1xf32>
    %25 = vector.broadcast %24 : vector<16x1xf32> to vector<16x32xf32>
    %26 = arith.subf %0, %25 : vector<16x32xf32>
    %27 = arith.mulf %26, %26 : vector<16x32xf32>
    %cst_21 = arith.constant dense<0.000000e+00> : vector<16xf32>
    %28 = vector.multi_reduction <add>, %27, %cst_21 [1] : vector<16x32xf32> to vector<16xf32>
    %29 = vector.shape_cast %28 : vector<16xf32> to vector<16x1xf32>
    %cst_22 = arith.constant 0.0322580636 : f32
    %30 = vector.broadcast %cst_22 : f32 to vector<16x1xf32>
    %31 = arith.mulf %29, %30 : vector<16x1xf32>
    %32 = vector.broadcast %24 : vector<16x1xf32> to vector<16x32xf32>
    %33 = arith.subf %0, %32 : vector<16x32xf32>
    %34 = vector.broadcast %1 : vector<1x32xf32> to vector<16x32xf32>
    %35 = arith.mulf %34, %33 : vector<16x32xf32>
    %36 = math.sqrt %31 : vector<16x1xf32>
    %cst_23 = arith.constant 9.99999997E-7 : f32
    %37 = vector.broadcast %cst_23 : f32 to vector<16x1xf32>
    %38 = arith.addf %36, %37 : vector<16x1xf32>
    %39 = vector.broadcast %38 : vector<16x1xf32> to vector<16x32xf32>
    %40 = arith.divf %35, %39 : vector<16x32xf32>
    %41 = vector.broadcast %2 : vector<1x32xf32> to vector<16x32xf32>
    %42 = arith.addf %40, %41 : vector<16x32xf32>
    %cst_24 = arith.constant dense<0.000000e+00> : vector<16x96xf32>
    %43 = tpu.matmul %42, %5, %cst_24 {dimension_numbers = #tpu.dot_dimension_numbers<[1], [0], [0], [1], [0, 0, 1, 1], [], []>, precision = #tpu.contract_precision<fp32>} : vector<16x32xf32>, vector<32x96xf32>, vector<16x96xf32> -> vector<16x96xf32>
    %44 = vector.broadcast %6 : vector<1x96xf32> to vector<16x96xf32>
    %45 = arith.addf %43, %44 : vector<16x96xf32>
    %46 = vector.extract_strided_slice %45 {offsets = [0, 0], sizes = [16, 8], strides = [1, 1]} : vector<16x96xf32> to vector<16x8xf32>
    %47 = vector.extract_strided_slice %45 {offsets = [0, 8], sizes = [16, 8], strides = [1, 1]} : vector<16x96xf32> to vector<16x8xf32>
    %48 = vector.extract_strided_slice %45 {offsets = [0, 16], sizes = [16, 8], strides = [1, 1]} : vector<16x96xf32> to vector<16x8xf32>
    %49 = vector.extract_strided_slice %45 {offsets = [0, 24], sizes = [16, 8], strides = [1, 1]} : vector<16x96xf32> to vector<16x8xf32>
    %50 = tpu.concatenate %46, %47, %48, %49 in 0 : vector<16x8xf32>, vector<16x8xf32>, vector<16x8xf32>, vector<16x8xf32> -> vector<64x8xf32>
    %51 = vector.extract_strided_slice %45 {offsets = [0, 32], sizes = [16, 8], strides = [1, 1]} : vector<16x96xf32> to vector<16x8xf32>
    %52 = vector.extract_strided_slice %45 {offsets = [0, 40], sizes = [16, 8], strides = [1, 1]} : vector<16x96xf32> to vector<16x8xf32>
    %53 = vector.extract_strided_slice %45 {offsets = [0, 48], sizes = [16, 8], strides = [1, 1]} : vector<16x96xf32> to vector<16x8xf32>
    %54 = vector.extract_strided_slice %45 {offsets = [0, 56], sizes = [16, 8], strides = [1, 1]} : vector<16x96xf32> to vector<16x8xf32>
    %55 = tpu.concatenate %51, %52, %53, %54 in 0 : vector<16x8xf32>, vector<16x8xf32>, vector<16x8xf32>, vector<16x8xf32> -> vector<64x8xf32>
    %56 = vector.extract_strided_slice %45 {offsets = [0, 64], sizes = [16, 8], strides = [1, 1]} : vector<16x96xf32> to vector<16x8xf32>
    %57 = vector.extract_strided_slice %45 {offsets = [0, 72], sizes = [16, 8], strides = [1, 1]} : vector<16x96xf32> to vector<16x8xf32>
    %58 = vector.extract_strided_slice %45 {offsets = [0, 80], sizes = [16, 8], strides = [1, 1]} : vector<16x96xf32> to vector<16x8xf32>
    %59 = vector.extract_strided_slice %45 {offsets = [0, 88], sizes = [16, 8], strides = [1, 1]} : vector<16x96xf32> to vector<16x8xf32>
    %60 = tpu.concatenate %56, %57, %58, %59 in 0 : vector<16x8xf32>, vector<16x8xf32>, vector<16x8xf32>, vector<16x8xf32> -> vector<64x8xf32>
    "tpu.trace_start"() <{level = 10 : i32, message = "qd,kd->qk"}> : () -> ()
    %cst_25 = arith.constant dense<0.000000e+00> : vector<64x64xf32>
    %61 = tpu.matmul %50, %55, %cst_25 {dimension_numbers = #tpu.dot_dimension_numbers<[1], [1], [0], [0], [0, 0, 1, 0], [], []>, precision = #tpu.contract_precision<fp32>} : vector<64x8xf32>, vector<64x8xf32>, vector<64x64xf32> -> vector<64x64xf32>
    "tpu.trace_stop"() : () -> ()
    %cst_26 = arith.constant 0.353553385 : f32
    %62 = vector.broadcast %cst_26 : f32 to vector<64x64xf32>
    %63 = arith.mulf %61, %62 : vector<64x64xf32>
    %64 = arith.addf %63, %13 : vector<64x64xf32>
    %65 = vector.broadcast %20 : vector<1x64xf32> to vector<64x64xf32>
    %66 = arith.addf %64, %65 : vector<64x64xf32>
    %cst_27 = arith.constant dense<0xFF800000> : vector<64xf32>
    %67 = vector.multi_reduction <maximumf>, %66, %cst_27 [1] : vector<64x64xf32> to vector<64xf32>
    %68 = vector.shape_cast %67 : vector<64xf32> to vector<64x1xf32>
    %69 = vector.broadcast %68 : vector<64x1xf32> to vector<64x64xf32>
    %70 = arith.subf %66, %69 : vector<64x64xf32>
    %71 = math.exp %70 : vector<64x64xf32>
    %cst_28 = arith.constant dense<0.000000e+00> : vector<64xf32>
    %72 = vector.multi_reduction <add>, %71, %cst_28 [1] : vector<64x64xf32> to vector<64xf32>
    %73 = vector.shape_cast %72 : vector<64xf32> to vector<64x1xf32>
    %74 = vector.broadcast %73 : vector<64x1xf32> to vector<64x64xf32>
    %75 = arith.divf %71, %74 : vector<64x64xf32>
    %cst_29 = arith.constant dense<0.000000e+00> : vector<64x8xf32>
    %76 = tpu.matmul %75, %60, %cst_29 {dimension_numbers = #tpu.dot_dimension_numbers<[1], [0], [0], [1], [0, 0, 1, 1], [], []>, precision = #tpu.contract_precision<fp32>} : vector<64x64xf32>, vector<64x8xf32>, vector<64x8xf32> -> vector<64x8xf32>
    %77 = vector.extract_strided_slice %76 {offsets = [0, 0], sizes = [16, 8], strides = [1, 1]} : vector<64x8xf32> to vector<16x8xf32>
    %78 = vector.extract_strided_slice %76 {offsets = [16, 0], sizes = [16, 8], strides = [1, 1]} : vector<64x8xf32> to vector<16x8xf32>
    %79 = vector.extract_strided_slice %76 {offsets = [32, 0], sizes = [16, 8], strides = [1, 1]} : vector<64x8xf32> to vector<16x8xf32>
    %80 = vector.extract_strided_slice %76 {offsets = [48, 0], sizes = [16, 8], strides = [1, 1]} : vector<64x8xf32> to vector<16x8xf32>
    %81 = tpu.concatenate %77, %78, %79, %80 in 1 : vector<16x8xf32>, vector<16x8xf32>, vector<16x8xf32>, vector<16x8xf32> -> vector<16x32xf32>
    %cst_30 = arith.constant dense<0.000000e+00> : vector<16x32xf32>
    %82 = tpu.matmul %81, %7, %cst_30 {dimension_numbers = #tpu.dot_dimension_numbers<[1], [0], [0], [1], [0, 0, 1, 1], [], []>, precision = #tpu.contract_precision<fp32>} : vector<16x32xf32>, vector<32x32xf32>, vector<16x32xf32> -> vector<16x32xf32>
    %83 = arith.addf %0, %82 : vector<16x32xf32>
    %84 = vector.broadcast %8 : vector<1x32xf32> to vector<16x32xf32>
    %85 = arith.addf %83, %84 : vector<16x32xf32>
    %cst_31 = arith.constant dense<0.000000e+00> : vector<16xf32>
    %86 = vector.multi_reduction <add>, %85, %cst_31 [1] : vector<16x32xf32> to vector<16xf32>
    %87 = vector.shape_cast %86 : vector<16xf32> to vector<16x1xf32>
    %cst_32 = arith.constant 3.200000e+01 : f32
    %88 = vector.broadcast %cst_32 : f32 to vector<16x1xf32>
    %89 = arith.divf %87, %88 : vector<16x1xf32>
    %90 = vector.broadcast %89 : vector<16x1xf32> to vector<16x32xf32>
    %91 = arith.subf %85, %90 : vector<16x32xf32>
    %92 = arith.mulf %91, %91 : vector<16x32xf32>
    %cst_33 = arith.constant dense<0.000000e+00> : vector<16xf32>
    %93 = vector.multi_reduction <add>, %92, %cst_33 [1] : vector<16x32xf32> to vector<16xf32>
    %94 = vector.shape_cast %93 : vector<16xf32> to vector<16x1xf32>
    %cst_34 = arith.constant 0.0322580636 : f32
    %95 = vector.broadcast %cst_34 : f32 to vector<16x1xf32>
    %96 = arith.mulf %94, %95 : vector<16x1xf32>
    %97 = vector.broadcast %89 : vector<16x1xf32> to vector<16x32xf32>
    %98 = arith.subf %85, %97 : vector<16x32xf32>
    %99 = vector.broadcast %3 : vector<1x32xf32> to vector<16x32xf32>
    %100 = arith.mulf %99, %98 : vector<16x32xf32>
    %101 = math.sqrt %96 : vector<16x1xf32>
    %cst_35 = arith.constant 9.99999997E-7 : f32
    %102 = vector.broadcast %cst_35 : f32 to vector<16x1xf32>
    %103 = arith.addf %101, %102 : vector<16x1xf32>
    %104 = vector.broadcast %103 : vector<16x1xf32> to vector<16x32xf32>
    %105 = arith.divf %100, %104 : vector<16x32xf32>
    %106 = vector.broadcast %4 : vector<1x32xf32> to vector<16x32xf32>
    %107 = arith.addf %105, %106 : vector<16x32xf32>
    %cst_36 = arith.constant dense<0.000000e+00> : vector<16x64xf32>
    %108 = tpu.matmul %107, %9, %cst_36 {dimension_numbers = #tpu.dot_dimension_numbers<[1], [0], [0], [1], [0, 0, 1, 1], [], []>, precision = #tpu.contract_precision<fp32>} : vector<16x32xf32>, vector<32x64xf32>, vector<16x64xf32> -> vector<16x64xf32>
    %109 = vector.broadcast %10 : vector<1x64xf32> to vector<16x64xf32>
    %110 = arith.addf %108, %109 : vector<16x64xf32>
    %cst_37 = arith.constant 0.000000e+00 : f32
    %111 = vector.broadcast %cst_37 : f32 to vector<16x64xf32>
    %112 = arith.maximumf %110, %111 : vector<16x64xf32>
    %cst_38 = arith.constant dense<0.000000e+00> : vector<16x32xf32>
    %113 = tpu.matmul %112, %11, %cst_38 {dimension_numbers = #tpu.dot_dimension_numbers<[1], [0], [0], [1], [0, 0, 1, 1], [], []>, precision = #tpu.contract_precision<fp32>} : vector<16x64xf32>, vector<64x32xf32>, vector<16x32xf32> -> vector<16x32xf32>
    %114 = arith.addf %85, %113 : vector<16x32xf32>
    %115 = vector.broadcast %12 : vector<1x32xf32> to vector<16x32xf32>
    %116 = arith.addf %114, %115 : vector<16x32xf32>
    %c0_39 = arith.constant 0 : index
    %c0_40 = arith.constant 0 : index
    %117 = vector.load %arg4[%c0_39, %c0_40] : memref<16x32xf32, #tpu.memory_space<vmem>>, vector<16x32xf32>
    tpu.vector_store %arg4[%c0_39, %c0_40], %116 {strides = array<i32>} : memref<16x32xf32, #tpu.memory_space<vmem>>, vector<16x32xf32>,
    return
  }
  func.func @transform_0(%arg0: i32) -> (i32, i32) {
    %c0_i32 = arith.constant 0 : i32
    %c0_i32_0 = arith.constant 0 : i32
    %c0_i32_1 = arith.constant 0 : i32
    return %c0_i32, %c0_i32_0 : i32, i32
  }
  func.func @transform_1(%arg0: i32) -> (i32, i32) {
    %c0_i32 = arith.constant 0 : i32
    %c0_i32_0 = arith.constant 0 : i32
    %c0_i32_1 = arith.constant 0 : i32
    return %c0_i32, %c0_i32_0 : i32, i32
  }
  func.func @transform_2(%arg0: i32) -> (i32, i32) {
    %c0_i32 = arith.constant 0 : i32
    %c0_i32_0 = arith.constant 0 : i32
    %c0_i32_1 = arith.constant 0 : i32
    return %c0_i32, %c0_i32_0 : i32, i32
  }
  func.func @transform_3(%arg0: i32) -> (i32, i32) {
    %c0_i32 = arith.constant 0 : i32
    %c0_i32_0 = arith.constant 0 : i32
    %c0_i32_1 = arith.constant 0 : i32
    return %c0_i32, %c0_i32_0 : i32, i32
  }
}

</mosaic_0001>

<bundles_post_ra>
// kernel: tpu_custom_call.1
= control target key start
LH: loop header
LB: loop body
LE: loop exit
PB: predicated region body
PF: predicated region fallthrough
CT: control target
= control target key end

     0   :  { %8 = vsyncpa [#allocation3], 0  ;;  %s6790_s0 = inlined_call_operand.hbm [shape: f32[16,32], index: 0, kind: input, shape index: {}]   ;;  %s6791_s1 = inlined_call_operand.vmem [shape: f32[1,16], index: 1, kind: input, shape index: {}]   ;;  %s6792_s2 = inlined_call_operand.hbm [shape: f32[264,128], index: 2, kind: input, shape index: {}]   ;;  %s6793_s3 = inlined_call_operand.hbm [shape: f32[16,32], index: 3, kind: output, shape index: {}]  }
   0x1   :  { %9 = vsyncpa [#allocation6], 0 }
   0x2   :  { %10 = vsyncpa [#allocation4], 0  ;;  %s5525_s12 = smov [#allocation2]  }
   0x3   :  { %s16_s13 = sshll.u32 %s5525_s12, 4  ;;  %s17_s13 = int_to_ptr.vmem [resolvable:$true] %s16_s13 }
   0x4   :  { %s5467_s14 = scalar_lea.vmem %s17_s13, 256  ;;  %p5472_p1 = scmp.lt.s32.totalorder %s17_s13, %s17_s13 }
   0x5   :  { %p5468_p0 = scmp.ne.s32.totalorder %s17_s13, %s5467_s14  ;;  %p5473_p2 = scmp.lt.s32.totalorder %s5467_s14, %s5467_s14 }
   0x7   :  { %p5474_p3 = por %p5473_p2, %p5472_p1 }
   0x9   :  { %p5475_p4 = pnand %p5474_p3, %p5468_p0 }
   0xb   :  { %5478 = shalt.err (!%p5475_p4)
}
   0xc   :  { %s5526_s15 = smov 128   ;;  %s5527_s16 = smov 8  }
   0xd   :  { %22 = dma.hbm_to_vmem [thread:$0]  %s6790_s0, 256, %s17_s13, [#allocation3], %s5526_s15, %s5526_s15, %s5527_s16  }
   0xe   :  { %s5528_s19 = smov [#allocation5]  }
   0xf   :  { %s30_s20 = sshll.u32 %s5528_s19, 4  ;;  %s31_s20 = int_to_ptr.vmem [resolvable:$true] %s30_s20 }
  0x10   :  { %s5487_s21 = scalar_lea.vmem %s31_s20, 4224  ;;  %p5492_p6 = scmp.lt.s32.totalorder %s31_s20, %s31_s20 }
  0x11   :  { %p5488_p5 = scmp.ne.s32.totalorder %s31_s20, %s5487_s21  ;;  %p5493_p7 = scmp.lt.s32.totalorder %s5487_s21, %s5487_s21 }
  0x13   :  { %p5494_p8 = por %p5493_p7, %p5492_p6 }
  0x15   :  { %p5495_p9 = pnand %p5494_p8, %p5488_p5 }
  0x17   :  { %5498 = shalt.err (!%p5495_p9)
}
  0x18   :  { %36 = dma.hbm_to_vmem [thread:$0]  %s6792_s2, 4224, %s31_s20, [#allocation6], %s5526_s15, %s5526_s15, %s5527_s16  }
  0x19   :  { %5519 = dma.done.wait [#allocation3], 256  }
  0x1a   :  { %5520 = vsyncadd [#allocation3], 4294967040 }
  0x1b   :  { %5521 = dma.done.wait [#allocation6], 4224  }
  0x1c   :  { %5522 = vsyncadd [#allocation6], 4294963072  ;;  %vm98_vm0 = vcmask 261120   ;;  %v43_v0 = vld [vmem:[#allocation2] sm:$0xff]  ;;  %v44_v1 = vld [vmem:[#allocation2 + $0x8] sm:$0xff]  ;;  %s5529_s0 = smov 104  }
  0x1d   :  { %v104_v2 = vsel %vm98_vm0, %v43_v0, 0.0  ;;  %v107_v3 = vsel %vm98_vm0, %v44_v1, 0.0  ;;  %v52_v14 = vld [vmem:[#allocation5 + $0x20] sm:$0xff]  ;;  %v51_v15 = vld [vmem:[#allocation5 + $0x18] sm:$0xff]  ;;  %v50_v16 = vld [vmem:[#allocation5 + $0x10] sm:$0xff]  ;;  %vm725_vm5 = vcmask 64512  }
  0x1e   :  { %105 = vadd.xlane.f32.xlu0 %v104_v2  ;;  %v5584_v17 = vand.u32 4294901760, %v52_v14  ;;  %v5586_v18 = vand.u32 4294901760, %v51_v15  ;;  %v5588_v19 = vand.u32 4294901760, %v50_v16  ;;  %v49_v29 = vld [vmem:[#allocation5 + $0x8] sm:$0xff]  ;;  %v4378_v54 = vld [vmem:[#allocation5] ss:$0 sm:$0xff] }
  0x1f   :  { %v5619_v30 = vand.u32 4294901760, %v49_v29  ;;  %v4379_v57 = vld [vmem:[#allocation5 + $0x1] ss:$0 sm:$0xff]  ;;  %s5530_s2 = smov 120   ;;  %s5531_s24 = smov 112   ;;  %vm96_vm6 = vcmask 130048  }
  0x20   :  { %v5591_v20 = vsub.f32 %v52_v14, %v5584_v17  ;;  %v5594_v21 = vsub.f32 %v51_v15, %v5586_v18  ;;  %v5597_v22 = vsub.f32 %v50_v16, %v5588_v19  ;;  %4746 = vmatprep.subr.mxu0 %v5584_v17  ;;  %s5532_s25 = smov 96   ;;  %s5533_s28 = smov 16   ;;  %vm100_vm7 = vcmask 392192  }
  0x21   :  { %4747 = vmatpush3.msra.mxu0 %v5584_v17  ;;  %v5623_v33 = vsub.f32 %v49_v29, %v5619_v30  ;;  %s5534_s29 = smov 32   ;;  %vm1624_vm9 = vcmask 523264   ;;  %s5537_s30 = smov 64   ;;  %vm2627_vm10 = vcmask 195584  }
  0x22   :  { %108 = vadd.xlane.f32.xlu0 %v107_v3  ;;  %v5602_v23 = vand.u32 4294901760, %v5591_v20  ;;  %v5605_v24 = vand.u32 4294901760, %v5594_v21  ;;  %v5608_v25 = vand.u32 4294901760, %v5597_v22  ;;  %4748 = vmatprep.subr.mxu0 %v5586_v18  ;;  %s5538_s4 = smov 24   ;;  %s5539_s5 = smov [#allocation7]  }
  0x23   :  { %4749 = vmatpush3.msra.mxu0 %v5586_v18  ;;  %v5628_v35 = vand.u32 4294901760, %v5623_v33  ;;  %s4365_s6 = sshll.u32 %s5539_s5, 4  ;;  %s4366_s6 = int_to_ptr.vmem [resolvable:$true] %s4365_s6 }
  0x24   :  { %v284_v26 = vsub.f32 %v5591_v20, %v5602_v23  ;;  %v291_v27 = vsub.f32 %v5594_v21, %v5605_v24  ;;  %v298_v28 = vsub.f32 %v5597_v22, %v5608_v25  ;;  %4750 = vmatprep.subr.mxu0 %v5588_v19  ;;  %s5499_s7 = scalar_lea.vmem %s4366_s6, 256  ;;  %p5504_p11 = scmp.lt.s32.totalorder %s4366_s6, %s4366_s6 }
  0x25   :  { %4751 = vmatpush3.msra.mxu0 %v5588_v19  ;;  %v305_v36 = vsub.f32 %v5623_v33, %v5628_v35  ;;  %p5500_p10 = scmp.ne.s32.totalorder %s4366_s6, %s5499_s7  ;;  %p5505_p12 = scmp.lt.s32.totalorder %s5499_s7, %s5499_s7 }
  0x26   :  { %v285_v31 = vand.u32 4294901760, %v284_v26  ;;  %v292_v32 = vand.u32 4294901760, %v291_v27  ;;  %4752 = vmatprep.subr.mxu0 %v5619_v30  ;;  %v299_v34 = vand.u32 4294901760, %v298_v28 }
  0x27   :  { %4753 = vmatpush3.msra.mxu0 %v5619_v30  ;;  %v306_v37 = vand.u32 4294901760, %v305_v36  ;;  %p5506_p13 = por %p5505_p12, %p5504_p11 }
  0x28   :  { %4757 = vmatprep.subr.mxu1 %v285_v31  ;;  %4768 = vmatprep.subr.mxu0 %v5591_v20 }
  0x29   :  { %4758 = vmatpush3.msra.mxu1 %v285_v31  ;;  %p5507_p0 = pnand %p5506_p13, %p5500_p10 }
  0x2a   :  { %4759 = vmatprep.subr.mxu1 %v292_v32 }
  0x2b   :  { %4760 = vmatpush3.msra.mxu1 %v292_v32 }
  0x2c   :  { %4761 = vmatprep.subr.mxu1 %v299_v34 }
  0x2d   :  { %4762 = vmatpush3.msra.mxu1 %v299_v34 }
  0x2e   :  { %4763 = vmatprep.subr.mxu1 %v306_v37 }
  0x2f   :  { %4764 = vmatpush3.msra.mxu1 %v306_v37 }
  0x30   :  { %4779 = vmatprep.subr.mxu1 %v5584_v17 }
  0xa7   :  { %v106_v4 = vpop.xlane.xlu0 %105 }
  0xa8   :  { %v111_v5 = vmul.f32 0.03125, %v106_v4 }
  0xaa   :  { %v5574_v6 = vsub.f32 %v43_v0, %v111_v5 }
  0xab   :  { %v109_v7 = vpop.xlane.xlu0 %108 }
  0xac   :  { %v112_v8 = vmul.f32 0.03125, %v109_v7  ;;  %v115_v9 = vmul.f32 %v5574_v6, %v5574_v6  ;;  %v129_v55 = vmul.f32 %v4378_v54, %v5574_v6 }
  0xae   :  { %v5578_v10 = vsub.f32 %v44_v1, %v112_v8  ;;  %v117_v11 = vsel %vm98_vm0, %v115_v9, 0.0 }
  0xaf   :  { %118 = vadd.xlane.f32.xlu1 %v117_v11 }
  0xb0   :  { %v116_v12 = vmul.f32 %v5578_v10, %v5578_v10  ;;  %v130_v59 = vmul.f32 %v4378_v54, %v5578_v10 }
  0xb2   :  { %v120_v13 = vsel %vm98_vm0, %v116_v12, 0.0 }
  0xb3   :  { %121 = vadd.xlane.f32.xlu1 %v120_v13  ;;  %v4380_v13 = vld [vmem:[#allocation5 + $0x28] ss:$0 sm:$0xff] }
 0x138   :  { %v119_v38 = vpop.xlane.xlu1 %118 }
 0x139   :  { %v123_v39 = vmul.f32 0.032258064, %v119_v38 }
 0x13b   :  { %5409 = vrsqrt.f32 %v123_v39  ;;  %vm133_vm1 = vcmp.eq.f32.partialorder %v123_v39, inf  ;;  %v136_v44 = vand.u32 2147483648, %v123_v39  ;;  %vm135_vm2 = vcmp.eq.f32.partialorder %v123_v39, 0.0 }
 0x13c   :  { %v122_v40 = vpop.xlane.xlu1 %121 }
 0x13d   :  { %v124_v41 = vmul.f32 0.032258064, %v122_v40 }
 0x13f   :  { %5411 = vrsqrt.f32 %v124_v41  ;;  %vm140_vm3 = vcmp.eq.f32.partialorder %v124_v41, inf  ;;  %v143_v50 = vand.u32 2147483648, %v124_v41  ;;  %vm142_vm4 = vcmp.eq.f32.partialorder %v124_v41, 0.0 }
 0x148   :  { %v5410_v42 = vpop.eup %5409 }
 0x149   :  { %v132_v43 = vmul.f32 %v5410_v42, %v123_v39 }
 0x14b   :  { %v134_v45 = vsel %vm133_vm1, %v123_v39, %v132_v43 }
 0x14c   :  { %v5412_v46 = vpop.eup %5411  ;;  %v137_v47 = vsel %vm135_vm2, %v136_v44, %v134_v45 }
 0x14d   :  { %v145_v48 = vadd.f32 1e-06, %v137_v47  ;;  %v139_v49 = vmul.f32 %v5412_v46, %v124_v41 }
 0x14f   :  { %5413 = vrcp.f32 %v145_v48  ;;  %v141_v51 = vsel %vm140_vm3, %v124_v41, %v139_v49  ;;  %v83_v49 = vlaneseq }
 0x150   :  { %v144_v52 = vsel %vm142_vm4, %v143_v50, %v141_v51  ;;  %v5715_v51 = vld [vmem:[%s6791_s1] sm:$0x1]  ;;  %s5535_s1 = smov 48  }
 0x151   :  { %v146_v53 = vadd.f32 1e-06, %v144_v52  ;;  %v5710_v50 = vshrl.u32 %v83_v49, 7 }
 0x153   :  { %5415 = vrcp.f32 %v146_v53  ;;  %v6794_v52 = vsub.s32 0, %v5710_v50 }
 0x155   :  { %v86_v54 = vrot.slane %v5715_v51, %v6794_v52 }
 0x15c   :  { %v5414_v56 = vpop.eup %5413 }
 0x15d   :  { %v148_v58 = vmul.f32 %v5414_v56, %v129_v55 }
 0x15f   :  { %v155_v60 = vadd.f32 %v4379_v57, %v148_v58 }
 0x160   :  { %v5416_v61 = vpop.eup %5415 }
 0x161   :  { %v162_v62 = vsel %vm98_vm0, %v155_v60, 0  ;;  %v150_v63 = vmul.f32 %v5416_v61, %v130_v59 }
 0x162   :  { %v236_v0 = vand.u32 4294901760, %v162_v62 }
 0x163   :  { %v156_v1 = vadd.f32 %v4379_v57, %v150_v63 }
 0x164   :  { %4765 = vmatprep.mubr.f32.mxu1 %v236_v0  ;;  %v237_v2 = vsub.f32 %v162_v62, %v236_v0 }
 0x165   :  { %v165_v3 = vsel %vm98_vm0, %v156_v1, 0 }
 0x166   :  { %v246_v4 = vand.u32 4294901760, %v165_v3  ;;  %v238_v5 = vand.u32 4294901760, %v237_v2 }
 0x168   :  { %v247_v7 = vsub.f32 %v165_v3, %v246_v4  ;;  %4766 = vmatmul.mubr.f32.vlgmr.msra.gmra.mxu1 %v246_v4  ;;  %v239_v6 = vsub.f32 %v237_v2, %v238_v5 }
 0x169   :  { %4780 = vmatpush3.msra.mxu1 %v5584_v17  ;;  %4787 = vmatprep.mubr.f32.mxu1 %v238_v5 }
 0x16a   :  { %4781 = vmatprep.subr.mxu1 %v5586_v18  ;;  %v240_v8 = vand.u32 4294901760, %v239_v6  ;;  %v248_v9 = vand.u32 4294901760, %v247_v7 }
 0x16b   :  { %4782 = vmatpush3.msra.mxu1 %v5586_v18 }
 0x16c   :  { %4783 = vmatprep.subr.mxu1 %v5588_v19  ;;  %4754 = vmatprep.mubr.f32.mxu0 %v240_v8  ;;  %v249_v10 = vsub.f32 %v247_v7, %v248_v9 }
 0x16d   :  { %4784 = vmatpush3.msra.mxu1 %v5588_v19 }
 0x16e   :  { %4785 = vmatprep.subr.mxu1 %v5619_v30  ;;  %v250_v11 = vand.u32 4294901760, %v249_v10 }
 0x16f   :  { %4786 = vmatpush3.msra.mxu1 %v5619_v30 }
 0x170   :  { %4788 = vmatmul.mubr.f32.vlgmr.msra.gmra.mxu1 %v248_v9  ;;  %4801 = vmatprep.subr.mxu1 %v5584_v17 }
 0x171   :  { %4755 = vmatmul.mubr.f32.vlgmr.msra.gmra.mxu0 %v250_v11  ;;  %4802 = vmatpush3.msra.mxu1 %v5584_v17 }
 0x172   :  { %4769 = vmatpush3.msra.mxu0 %v5591_v20  ;;  %4809 = vmatprep.mubr.f32.mxu1 %v236_v0 }
 0x173   :  { %4770 = vmatprep.subr.mxu0 %v5594_v21  ;;  %4776 = vmatprep.mubr.f32.mxu0 %v237_v2 }
 0x174   :  { %4803 = vmatprep.subr.mxu1 %v5586_v18  ;;  %4771 = vmatpush3.msra.mxu0 %v5594_v21 }
 0x175   :  { %4804 = vmatpush3.msra.mxu1 %v5586_v18  ;;  %4772 = vmatprep.subr.mxu0 %v5597_v22 }
 0x176   :  { %4805 = vmatprep.subr.mxu1 %v5588_v19  ;;  %4773 = vmatpush3.msra.mxu0 %v5597_v22 }
 0x177   :  { %4806 = vmatpush3.msra.mxu1 %v5588_v19  ;;  %4774 = vmatprep.subr.mxu0 %v5623_v33 }
 0x178   :  { %4807 = vmatprep.subr.mxu1 %v5619_v30  ;;  %4775 = vmatpush3.msra.mxu0 %v5623_v33 }
 0x179   :  { %4808 = vmatpush3.msra.mxu1 %v5619_v30  ;;  %4777 = vmatmul.mubr.f32.vlgmr.msra.gmra.mxu0 %v247_v7 }
 0x17a   :  { %4790 = vmatprep.subr.mxu0 %v5602_v23  ;;  %4810 = vmatmul.mubr.f32.vlgmr.msra.gmra.mxu1 %v246_v4 }
 0x17b   :  { %4791 = vmatpush3.msra.mxu0 %v5602_v23  ;;  %4798 = vmatprep.mubr.f32.mxu0 %v236_v0 }
 0x17c   :  { %4792 = vmatprep.subr.mxu0 %v5605_v24 }
 0x17d   :  { %4793 = vmatpush3.msra.mxu0 %v5605_v24 }
 0x17e   :  { %4794 = vmatprep.subr.mxu0 %v5608_v25 }
 0x17f   :  { %4795 = vmatpush3.msra.mxu0 %v5608_v25 }
 0x180   :  { %4796 = vmatprep.subr.mxu0 %v5628_v35 }
 0x181   :  { %4797 = vmatpush3.msra.mxu0 %v5628_v35 }
 0x182   :  { %4799 = vmatmul.mubr.f32.vlgmr.msra.gmra.mxu0 %v246_v4 }
 0x228   :  { %v4767_v14 = vpop.f32.mrf.mxu1 }
 0x22a   :  { %v343_v19 = vpop.f32.mrf.mxu1 }
 0x230   :  { %v4789_v21 = vpop.f32.mrf.mxu1 }
 0x231   :  { %v4756_v12 = vpop.f32.mrf.mxu0 }
 0x232   :  { %v253_v16 = vadd.f32 %v4756_v12, %v4380_v13  ;;  %v513_v25 = vpop.f32.mrf.mxu1 }
 0x233   :  { %v242_v15 = vpop.f32.mrf.mxu0 }
 0x234   :  { %v243_v17 = vadd.f32 %v4380_v13, %v242_v15  ;;  %v350_v20 = vadd.f32 %v4767_v14, %v253_v16 }
 0x236   :  { %v344_v24 = vadd.f32 %v343_v19, %v243_v17 }
 0x239   :  { %v4778_v18 = vpop.f32.mrf.mxu0 }
 0x23a   :  { %v437_v23 = vadd.f32 %v4778_v18, %v350_v20  ;;  %v4811_v28 = vpop.f32.mrf.mxu1 }
 0x23b   :  { %v429_v22 = vpop.f32.mrf.mxu0 }
 0x23c   :  { %v430_v26 = vadd.f32 %v429_v22, %v344_v24  ;;  %v522_v27 = vadd.f32 %v4789_v21, %v437_v23  ;;  %v685_v35 = vpop.f32.mrf.mxu1 }
 0x23e   :  { %v514_v31 = vadd.f32 %v513_v25, %v430_v26 }
 0x242   :  { %v4800_v29 = vpop.f32.mrf.mxu0 }
 0x243   :  { %v611_v30 = vadd.f32 %v4800_v29, %v522_v27 }
 0x244   :  { %v604_v32 = vpop.f32.mrf.mxu0 }
 0x245   :  { %v5668_v33 = vadd.f32 %v4811_v28, %v611_v30  ;;  %v605_v34 = vadd.f32 %v604_v32, %v514_v31 }
 0x247   :  { %v5670_v36 = vadd.f32 %v685_v35, %v605_v34  ;;  %707 = vrot.lane.b32.xlu0 %v5668_v33, %s5529_s0  ;;  %v728_v23 = vsel %vm725_vm5, %v5668_v33, 0 }
 0x248   :  { %v5799_v34 = vand.u32 4294901760, %v728_v23 }
 0x249   :  { %705 = vrot.lane.b32.xlu1 %v5670_v36, %s5529_s0  ;;  %v726_v37 = vsel %vm725_vm5, %v5670_v36, 0 }
 0x24a   :  { %v5676_v38 = vand.u32 4294901760, %v726_v37 }
 0x24b   :  { %699 = vrot.lane.b32.xlu0 %v5668_v33, %s5530_s2 }
 0x24c   :  { %4856 = vmatprep.mubr.f32.mxu1 %v5676_v38  ;;  %v5681_v39 = vsub.f32 %v726_v37, %v5676_v38 }
 0x24d   :  { %703 = vrot.lane.b32.xlu1 %v5668_v33, %s5531_s24 }
 0x24e   :  { %v6798_v40 = vand.u32 4294901760, %v5681_v39 }
 0x250   :  { %v834_v41 = vsub.f32 %v5681_v39, %v6798_v40 }
 0x251   :  { %701 = vrot.lane.b32.xlu1 %v5670_v36, %s5531_s24 }
 0x252   :  { %v835_v42 = vand.u32 4294901760, %v834_v41 }
 0x254   :  { %4828 = vmatprep.mubr.f32.mxu0 %v835_v42 }
 0x255   :  { %697 = vrot.lane.b32.xlu1 %v5670_v36, %s5530_s2 }
 0x2b9   :  { %v5690_v43 = vpop.permute.xlu0 %707 }
 0x2ba   :  { %723 = vrot.lane.b32.xlu0 %v5690_v43, %s5532_s25 }
 0x2bb   :  { %v5693_v44 = vpop.permute.xlu1 %705 }
 0x2bc   :  { %721 = vrot.lane.b32.xlu1 %v5693_v44, %s5532_s25 }
 0x2bd   :  { %v5699_v46 = vpop.permute.xlu0 %699 }
 0x2be   :  { %v732_v29 = vsel %vm725_vm5, %v5699_v46, 0 }
 0x2bf   :  { %v5696_v45 = vpop.permute.xlu1 %703 }
 0x2c0   :  { %719 = vrot.lane.b32.xlu0 %v5696_v45, %s5532_s25 }
 0x2c3   :  { %v5701_v47 = vpop.permute.xlu1 %701 }
 0x2c4   :  { %715 = vrot.lane.b32.xlu0 %v5699_v46, %s5532_s25  ;;  %717 = vrot.lane.b32.xlu1 %v5701_v47, %s5532_s25  ;;  %v734_v35 = vsel %vm725_vm5, %v5701_v47, 0 }
 0x2c7   :  { %v5705_v48 = vpop.permute.xlu1 %697 }
 0x2c8   :  { %711 = vrot.lane.b32.xlu0 %v5668_v33, %s5532_s25  ;;  %713 = vrot.lane.b32.xlu1 %v5705_v48, %s5532_s25  ;;  %v730_v20 = vsel %vm725_vm5, %v5705_v48, 0 }
 0x2c9   :  { %v5803_v37 = vand.u32 4294901760, %v730_v20 }
 0x2cc   :  { %709 = vrot.lane.b32.xlu1 %v5670_v36, %s5532_s25  ;;  %87 = vrot.lane.b32.xlu0 %v86_v54, %s5533_s28 }
 0x2d0   :  { %90 = vrot.lane.b32.xlu1 %v86_v54, %s5534_s29  ;;  %93 = vrot.lane.b32.xlu0 %v86_v54, %s5535_s1 }
 0x32c   :  { %v724_v53 = vpop.permute.xlu0 %723 }
 0x32d   :  { %v756_v55 = vsel %vm725_vm5, %v724_v53, 0 }
 0x32e   :  { %v5722_v56 = vand.u32 4294901760, %v756_v55  ;;  %v722_v57 = vpop.permute.xlu1 %721 }
 0x32f   :  { %v754_v58 = vsel %vm725_vm5, %v722_v57, 0  ;;  %v5817_v57 = vand.u32 4294901760, %v732_v29 }
 0x330   :  { %v5727_v59 = vsub.f32 %v756_v55, %v5722_v56  ;;  %v5729_v60 = vand.u32 4294901760, %v754_v58  ;;  %4812 = vmatprep.subr.mxu0 %v5722_v56 }
 0x331   :  { %4813 = vmatpush3.xpose.msra.mxu0 %v5722_v56 }
 0x332   :  { %v5734_v61 = vsub.f32 %v754_v58, %v5729_v60  ;;  %v720_v62 = vpop.permute.xlu0 %719  ;;  %4814 = vmatprep.subr.mxu0 %v5729_v60  ;;  %v5738_v63 = vand.u32 4294901760, %v5727_v59  ;;  %v5821_v58 = vsub.f32 %v728_v23, %v5799_v34 }
 0x333   :  { %v752_v0 = vsel %vm725_vm5, %v720_v62, 0  ;;  %v738_v62 = vsel %vm725_vm5, %v5693_v44, 0 }
 0x334   :  { %v5741_v1 = vand.u32 4294901760, %v752_v0  ;;  %v931_v2 = vsub.f32 %v5727_v59, %v5738_v63  ;;  %v5746_v3 = vand.u32 4294901760, %v5734_v61 }
 0x335   :  { %4815 = vmatpush3.xpose.msra.mxu0 %v5729_v60 }
 0x336   :  { %v5750_v4 = vsub.f32 %v752_v0, %v5741_v1  ;;  %v716_v5 = vpop.permute.xlu0 %715  ;;  %4816 = vmatprep.subr.mxu0 %v5741_v1  ;;  %v718_v7 = vpop.permute.xlu1 %717  ;;  %v932_v6 = vand.u32 4294901760, %v931_v2  ;;  %v938_v8 = vsub.f32 %v5734_v61, %v5746_v3  ;;  %v736_v0 = vsel %vm725_vm5, %v5696_v45, 0 }
 0x337   :  { %v748_v9 = vsel %vm725_vm5, %v716_v5, 0  ;;  %v750_v10 = vsel %vm725_vm5, %v718_v7, 0  ;;  %v5827_v2 = vand.u32 4294901760, %v734_v35  ;;  %v5830_v5 = vsub.f32 %v730_v20, %v5803_v37 }
 0x338   :  { %v5757_v11 = vand.u32 4294901760, %v748_v9  ;;  %v5759_v12 = vand.u32 4294901760, %v750_v10  ;;  %4840 = vmatprep.subr.mxu1 %v932_v6  ;;  %v939_v13 = vand.u32 4294901760, %v938_v8  ;;  %v5762_v14 = vand.u32 4294901760, %v5750_v4 }
 0x339   :  { %4817 = vmatpush3.xpose.msra.mxu0 %v5741_v1  ;;  %4841 = vmatpush3.xpose.msra.mxu1 %v932_v6  ;;  %v5853_v20 = vsub.f32 %v734_v35, %v5827_v2 }
 0x33a   :  { %v5766_v15 = vsub.f32 %v748_v9, %v5757_v11  ;;  %v5769_v16 = vsub.f32 %v750_v10, %v5759_v12  ;;  %v712_v17 = vpop.permute.xlu0 %711  ;;  %4818 = vmatprep.subr.mxu0 %v5759_v12  ;;  %4842 = vmatprep.subr.mxu1 %v939_v13  ;;  %v714_v18 = vpop.permute.xlu1 %713  ;;  %v945_v19 = vsub.f32 %v5750_v4, %v5762_v14 }
 0x33b   :  { %v744_v21 = vsel %vm725_vm5, %v712_v17, 0  ;;  %v746_v22 = vsel %vm725_vm5, %v714_v18, 0  ;;  %v5842_v10 = vsub.f32 %v732_v29, %v5817_v57  ;;  %v6796_v17 = vand.u32 4294901760, %v5821_v58 }
 0x33c   :  { %v5780_v24 = vand.u32 4294901760, %v744_v21  ;;  %v5782_v26 = vand.u32 4294901760, %v746_v22  ;;  %v946_v25 = vand.u32 4294901760, %v945_v19  ;;  %v5785_v27 = vand.u32 4294901760, %v5769_v16 }
 0x33d   :  { %4819 = vmatpush3.xpose.msra.mxu0 %v5759_v12  ;;  %4843 = vmatpush3.xpose.msra.mxu1 %v939_v13  ;;  %v5789_v28 = vand.u32 4294901760, %v5766_v15  ;;  %v5844_v13 = vand.u32 4294901760, %v736_v0  ;;  %v740_v18 = vsel %vm725_vm5, %v5690_v43, 0  ;;  %v5850_v19 = vand.u32 4294901760, %v738_v62 }
 0x33e   :  { %v5794_v30 = vsub.f32 %v746_v22, %v5782_v26  ;;  %4820 = vmatprep.subr.mxu0 %v5757_v11  ;;  %4844 = vmatprep.subr.mxu1 %v946_v25  ;;  %v710_v31 = vpop.permute.xlu1 %709  ;;  %v952_v32 = vsub.f32 %v5769_v16, %v5785_v27  ;;  %v5806_v41 = vsub.f32 %v744_v21, %v5780_v24  ;;  %v6795_v21 = vand.u32 4294901760, %v5830_v5 }
 0x33f   :  { %v742_v42 = vsel %vm725_vm5, %v710_v31, 0  ;;  %v959_v54 = vsub.f32 %v5766_v15, %v5789_v28  ;;  %v5862_v29 = vand.u32 4294901760, %v740_v18  ;;  %v5865_v31 = vsub.f32 %v736_v0, %v5844_v13 }
 0x340   :  { %v5809_v49 = vand.u32 4294901760, %v742_v42  ;;  %v953_v53 = vand.u32 4294901760, %v952_v32  ;;  %v5814_v55 = vand.u32 4294901760, %v5794_v30  ;;  %v5838_v9 = vand.u32 4294901760, %v5806_v41 }
 0x341   :  { %4821 = vmatpush3.xpose.msra.mxu0 %v5757_v11  ;;  %4845 = vmatpush3.xpose.msra.mxu1 %v946_v25  ;;  %v960_v6 = vand.u32 4294901760, %v959_v54  ;;  %v844_v32 = vsub.f32 %v5821_v58, %v6796_v17  ;;  %v6797_v35 = vand.u32 4294901760, %v5842_v10  ;;  %v873_v54 = vand.u32 4294901760, %v5853_v20 }
 0x342   :  { %4822 = vmatprep.subr.mxu0 %v5782_v26  ;;  %4846 = vmatprep.subr.mxu1 %v953_v53  ;;  %v5833_v7 = vsub.f32 %v742_v42, %v5809_v49  ;;  %v966_v8 = vsub.f32 %v5794_v30, %v5814_v55  ;;  %v973_v23 = vsub.f32 %v5806_v41, %v5838_v9 }
 0x343   :  { %v5873_v42 = vsub.f32 %v738_v62, %v5850_v19  ;;  %v845_v62 = vand.u32 4294901760, %v844_v32  ;;  %v864_v52 = vsub.f32 %v5842_v10, %v6797_v35  ;;  %v874_v17 = vsub.f32 %v5853_v20, %v873_v54 }
 0x344   :  { %v967_v22 = vand.u32 4294901760, %v966_v8  ;;  %v5859_v25 = vand.u32 4294901760, %v5833_v7  ;;  %v974_v0 = vand.u32 4294901760, %v973_v23  ;;  %v5883_v8 = vsub.f32 %v740_v18, %v5862_v29 }
 0x345   :  { %4823 = vmatpush3.xpose.msra.mxu0 %v5782_v26  ;;  %4847 = vmatpush3.xpose.msra.mxu1 %v953_v53  ;;  %v854_v53 = vsub.f32 %v5830_v5, %v6795_v21  ;;  %v883_v21 = vand.u32 4294901760, %v5865_v31  ;;  %v865_v32 = vand.u32 4294901760, %v864_v52  ;;  %v875_v40 = vand.u32 4294901760, %v874_v17 }
 0x346   :  { %4824 = vmatprep.subr.mxu0 %v5780_v24  ;;  %4848 = vmatprep.subr.mxu1 %v960_v6 }
 0x347   :  { %v855_v23 = vand.u32 4294901760, %v854_v53  ;;  %v884_v35 = vsub.f32 %v5865_v31, %v883_v21  ;;  %v903_v53 = vand.u32 4294901760, %v5883_v8 }
 0x349   :  { %4825 = vmatpush3.xpose.msra.mxu0 %v5780_v24  ;;  %4849 = vmatpush3.xpose.msra.mxu1 %v960_v6  ;;  %v980_v6 = vsub.f32 %v5833_v7, %v5859_v25  ;;  %v885_v52 = vand.u32 4294901760, %v884_v35  ;;  %v88_v35 = vpop.permute.xlu0 %87 }
 0x34a   :  { %4826 = vmatprep.subr.mxu0 %v5809_v49  ;;  %4850 = vmatprep.subr.mxu1 %v967_v22 }
 0x34b   :  { %v981_v18 = vand.u32 4294901760, %v980_v6 }
 0x34d   :  { %4827 = vmatpush3.xpose.msra.mxu0 %v5809_v49  ;;  %4851 = vmatpush3.xpose.msra.mxu1 %v967_v22  ;;  %v893_v22 = vand.u32 4294901760, %v5873_v42 }
 0x34e   :  { %4852 = vmatprep.subr.mxu1 %v974_v0  ;;  %4868 = vmatprep.subr.mxu0 %v5727_v59 }
 0x350   :  { %4829 = vmatmul.mubr.f32.vlgmr.msra.gmra.mxu0 %v845_v62  ;;  %v894_v62 = vsub.f32 %v5873_v42, %v893_v22 }
 0x351   :  { %4831 = vmatprep.mubr.f32.mxu0 %v855_v23  ;;  %4853 = vmatpush3.xpose.msra.mxu1 %v974_v0 }
 0x352   :  { %4869 = vmatpush3.xpose.msra.mxu0 %v5727_v59  ;;  %4854 = vmatprep.subr.mxu1 %v981_v18  ;;  %v904_v59 = vsub.f32 %v5883_v8, %v903_v53  ;;  %v895_v0 = vand.u32 4294901760, %v894_v62 }
 0x353   :  { %4870 = vmatprep.subr.mxu0 %v5734_v61 }
 0x354   :  { %4832 = vmatmul.mubr.f32.gmra.mxu0 %v865_v32 }
 0x355   :  { %4834 = vmatprep.mubr.f32.mxu0 %v875_v40  ;;  %4855 = vmatpush3.xpose.msra.mxu1 %v981_v18  ;;  %v905_v40 = vand.u32 4294901760, %v904_v59 }
 0x356   :  { %4871 = vmatpush3.xpose.msra.mxu0 %v5734_v61  ;;  %4896 = vmatprep.subr.mxu1 %v5722_v56  ;;  %v6799_v61 = vand.u32 4294901760, %v5681_v39 }
 0x357   :  { %4872 = vmatprep.subr.mxu0 %v5750_v4 }
 0x358   :  { %4835 = vmatmul.mubr.f32.gmra.mxu0 %v885_v52  ;;  %4857 = vmatmul.mubr.f32.vlgmr.msra.gmra.mxu1 %v5799_v34 }
 0x359   :  { %4837 = vmatprep.mubr.f32.mxu0 %v895_v0  ;;  %4859 = vmatprep.mubr.f32.mxu1 %v5803_v37 }
 0x35a   :  { %4873 = vmatpush3.xpose.msra.mxu0 %v5750_v4  ;;  %4897 = vmatpush3.xpose.msra.mxu1 %v5722_v56 }
 0x35b   :  { %4874 = vmatprep.subr.mxu0 %v5769_v16  ;;  %4898 = vmatprep.subr.mxu1 %v5729_v60 }
 0x35c   :  { %4838 = vmatmul.mubr.f32.gmra.mxu0 %v905_v40  ;;  %4860 = vmatmul.mubr.f32.gmra.mxu1 %v5817_v57 }
 0x35d   :  { %4862 = vmatprep.mubr.f32.mxu1 %v5827_v2  ;;  %4884 = vmatprep.mubr.f32.mxu0 %v5681_v39  ;;  %v6800_v39 = vand.u32 4294901760, %v5821_v58 }
 0x35e   :  { %4875 = vmatpush3.xpose.msra.mxu0 %v5769_v16  ;;  %4899 = vmatpush3.xpose.msra.mxu1 %v5729_v60 }
 0x35f   :  { %4876 = vmatprep.subr.mxu0 %v5766_v15  ;;  %4900 = vmatprep.subr.mxu1 %v5741_v1 }
 0x360   :  { %4863 = vmatmul.mubr.f32.gmra.mxu1 %v5844_v13 }
 0x361   :  { %4865 = vmatprep.mubr.f32.mxu1 %v5850_v19 }
 0x362   :  { %4877 = vmatpush3.xpose.msra.mxu0 %v5766_v15  ;;  %4901 = vmatpush3.xpose.msra.mxu1 %v5741_v1 }
 0x363   :  { %4878 = vmatprep.subr.mxu0 %v5794_v30  ;;  %4902 = vmatprep.subr.mxu1 %v5759_v12 }
 0x364   :  { %4866 = vmatmul.mubr.f32.gmra.mxu1 %v5862_v29 }
 0x365   :  { %4912 = vmatprep.mubr.f32.mxu1 %v6799_v61 }
 0x366   :  { %4879 = vmatpush3.xpose.msra.mxu0 %v5794_v30  ;;  %4903 = vmatpush3.xpose.msra.mxu1 %v5759_v12 }
 0x367   :  { %4880 = vmatprep.subr.mxu0 %v5806_v41  ;;  %4904 = vmatprep.subr.mxu1 %v5757_v11 }
 0x36a   :  { %4881 = vmatpush3.xpose.msra.mxu0 %v5806_v41  ;;  %4905 = vmatpush3.xpose.msra.mxu1 %v5757_v11 }
 0x36b   :  { %4882 = vmatprep.subr.mxu0 %v5833_v7  ;;  %4906 = vmatprep.subr.mxu1 %v5782_v26 }
 0x36e   :  { %4883 = vmatpush3.xpose.msra.mxu0 %v5833_v7  ;;  %4907 = vmatpush3.xpose.msra.mxu1 %v5782_v26 }
 0x36f   :  { %4908 = vmatprep.subr.mxu1 %v5780_v24  ;;  %4924 = vmatprep.subr.mxu0 %v5738_v63 }
 0x371   :  { %4885 = vmatmul.mubr.f32.vlgmr.msra.gmra.mxu0 %v5821_v58 }
 0x372   :  { %4887 = vmatprep.mubr.f32.mxu0 %v5830_v5  ;;  %4909 = vmatpush3.xpose.msra.mxu1 %v5780_v24 }
 0x373   :  { %4925 = vmatpush3.xpose.msra.mxu0 %v5738_v63  ;;  %4910 = vmatprep.subr.mxu1 %v5809_v49  ;;  %v6801_v63 = vand.u32 4294901760, %v5830_v5 }
 0x374   :  { %4926 = vmatprep.subr.mxu0 %v5746_v3 }
 0x375   :  { %4888 = vmatmul.mubr.f32.gmra.mxu0 %v5842_v10 }
 0x376   :  { %4890 = vmatprep.mubr.f32.mxu0 %v5853_v20  ;;  %4911 = vmatpush3.xpose.msra.mxu1 %v5809_v49 }
 0x377   :  { %4927 = vmatpush3.xpose.msra.mxu0 %v5746_v3  ;;  %4952 = vmatprep.subr.mxu1 %v5722_v56  ;;  %v6802_v3 = vand.u32 4294901760, %v5842_v10 }
 0x378   :  { %4928 = vmatprep.subr.mxu0 %v5762_v14 }
 0x379   :  { %4891 = vmatmul.mubr.f32.gmra.mxu0 %v5865_v31  ;;  %4913 = vmatmul.mubr.f32.vlgmr.msra.gmra.mxu1 %v6800_v39 }
 0x37a   :  { %4893 = vmatprep.mubr.f32.mxu0 %v5873_v42  ;;  %4915 = vmatprep.mubr.f32.mxu1 %v6801_v63  ;;  %v97_v42 = vsel %vm96_vm6, %v5715_v51, %v88_v35 }
 0x37b   :  { %4929 = vmatpush3.xpose.msra.mxu0 %v5762_v14  ;;  %4953 = vmatpush3.xpose.msra.mxu1 %v5722_v56 }
 0x37c   :  { %4930 = vmatprep.subr.mxu0 %v5785_v27  ;;  %4954 = vmatprep.subr.mxu1 %v5729_v60 }
 0x37d   :  { %4894 = vmatmul.mubr.f32.gmra.mxu0 %v5883_v8  ;;  %4916 = vmatmul.mubr.f32.gmra.mxu1 %v6802_v3  ;;  %v94_v8 = vpop.permute.xlu0 %93 }
 0x37e   :  { %4918 = vmatprep.mubr.f32.mxu1 %v873_v54  ;;  %4940 = vmatprep.mubr.f32.mxu0 %v5676_v38  ;;  %v91_v54 = vpop.permute.xlu1 %90 }
 0x37f   :  { %4931 = vmatpush3.xpose.msra.mxu0 %v5785_v27  ;;  %4955 = vmatpush3.xpose.msra.mxu1 %v5729_v60  ;;  %v99_v6 = vsel %vm98_vm0, %v97_v42, %v91_v54 }
 0x380   :  { %4932 = vmatprep.subr.mxu0 %v5789_v28  ;;  %4956 = vmatprep.subr.mxu1 %v5741_v1  ;;  %v101_v32 = vsel %vm100_vm7, %v99_v6, %v94_v8 }
 0x381   :  { %4919 = vmatmul.mubr.f32.gmra.mxu1 %v883_v21  ;;  %vm102_vm8 = vcmp.gt.f32.partialorder %v101_v32, 0.0 }
 0x382   :  { %4921 = vmatprep.mubr.f32.mxu1 %v893_v22 }
 0x383   :  { %4933 = vmatpush3.xpose.msra.mxu0 %v5789_v28  ;;  %4957 = vmatpush3.xpose.msra.mxu1 %v5741_v1 }
 0x384   :  { %4934 = vmatprep.subr.mxu0 %v5814_v55  ;;  %4958 = vmatprep.subr.mxu1 %v5759_v12 }
 0x385   :  { %4922 = vmatmul.mubr.f32.gmra.mxu1 %v903_v53 }
 0x386   :  { %4968 = vmatprep.mubr.f32.mxu1 %v5676_v38 }
 0x387   :  { %4935 = vmatpush3.xpose.msra.mxu0 %v5814_v55  ;;  %4959 = vmatpush3.xpose.msra.mxu1 %v5759_v12 }
 0x388   :  { %4936 = vmatprep.subr.mxu0 %v5838_v9  ;;  %4960 = vmatprep.subr.mxu1 %v5757_v11 }
 0x38b   :  { %4937 = vmatpush3.xpose.msra.mxu0 %v5838_v9  ;;  %4961 = vmatpush3.xpose.msra.mxu1 %v5757_v11 }
 0x38c   :  { %4938 = vmatprep.subr.mxu0 %v5859_v25  ;;  %4962 = vmatprep.subr.mxu1 %v5782_v26 }
 0x38f   :  { %4939 = vmatpush3.xpose.msra.mxu0 %v5859_v25  ;;  %4963 = vmatpush3.xpose.msra.mxu1 %v5782_v26 }
 0x390   :  { %4964 = vmatprep.subr.mxu1 %v5780_v24 }
 0x392   :  { %4941 = vmatmul.mubr.f32.vlgmr.msra.gmra.mxu0 %v5799_v34 }
 0x393   :  { %4943 = vmatprep.mubr.f32.mxu0 %v5803_v37  ;;  %4965 = vmatpush3.xpose.msra.mxu1 %v5780_v24 }
 0x394   :  { %4966 = vmatprep.subr.mxu1 %v5809_v49 }
 0x396   :  { %4944 = vmatmul.mubr.f32.gmra.mxu0 %v5817_v57 }
 0x397   :  { %4946 = vmatprep.mubr.f32.mxu0 %v5827_v2  ;;  %4967 = vmatpush3.xpose.msra.mxu1 %v5809_v49 }
 0x39a   :  { %4947 = vmatmul.mubr.f32.gmra.mxu0 %v5844_v13  ;;  %4969 = vmatmul.mubr.f32.vlgmr.msra.gmra.mxu1 %v5799_v34 }
 0x39b   :  { %4949 = vmatprep.mubr.f32.mxu0 %v5850_v19  ;;  %4971 = vmatprep.mubr.f32.mxu1 %v5803_v37 }
 0x39e   :  { %4950 = vmatmul.mubr.f32.gmra.mxu0 %v5862_v29  ;;  %4972 = vmatmul.mubr.f32.gmra.mxu1 %v5817_v57 }
 0x39f   :  { %4974 = vmatprep.mubr.f32.mxu1 %v5827_v2 }
 0x3a2   :  { %4975 = vmatmul.mubr.f32.gmra.mxu1 %v5844_v13 }
 0x3a3   :  { %4977 = vmatprep.mubr.f32.mxu1 %v5850_v19 }
 0x3a6   :  { %4978 = vmatmul.mubr.f32.gmra.mxu1 %v5862_v29 }
 0x410   :  { %v4830_v38 = vpop.f32.mrf.mxu0 }
 0x412   :  { %v837_v56 = vpop.f32.mrf.mxu0 }
 0x414   :  { %v4833_v60 = vpop.f32.mrf.mxu0 }
 0x416   :  { %v857_v1 = vpop.f32.mrf.mxu0 }
 0x418   :  { %v4858_v4 = vpop.f32.mrf.mxu1  ;;  %v4836_v11 = vpop.f32.mrf.mxu0 }
 0x419   :  { %v1025_v22 = vadd.f32 %v4858_v4, %v4830_v38 }
 0x41a   :  { %v1018_v12 = vpop.f32.mrf.mxu1  ;;  %v877_v15 = vpop.f32.mrf.mxu0 }
 0x41b   :  { %v1019_v53 = vadd.f32 %v1018_v12, %v837_v56 }
 0x41c   :  { %v4861_v14 = vpop.f32.mrf.mxu1  ;;  %v6014_v26 = vpop.f32.mrf.mxu0 }
 0x41d   :  { %v1037_v59 = vadd.f32 %v4861_v14, %v4833_v60  ;;  %v74_v60 = vld [vmem:[#allocation5 + $0xd0] sm:$0xff] }
 0x41e   :  { %v1030_v16 = vpop.f32.mrf.mxu1  ;;  %v897_v30 = vpop.f32.mrf.mxu0 }
 0x41f   :  { %v1031_v39 = vadd.f32 %v1030_v16, %v857_v1 }
 0x420   :  { %v4864_v24 = vpop.f32.mrf.mxu1 }
 0x422   :  { %v1042_v27 = vpop.f32.mrf.mxu1 }
 0x423   :  { %v1043_v12 = vadd.f32 %v1042_v27, %v877_v15 }
 0x424   :  { %v6016_v28 = vpop.f32.mrf.mxu1 }
 0x426   :  { %v1054_v34 = vpop.f32.mrf.mxu1 }
 0x427   :  { %v1055_v37 = vadd.f32 %v1054_v34, %v897_v30  ;;  %v1049_v30 = vadd.f32 %v4864_v24, %v4836_v11  ;;  %v1061_v11 = vadd.f32 %v6016_v28, %v6014_v26  ;;  %v76_v26 = vld [vmem:[#allocation5 + $0xe0] sm:$0xff] }
 0x431   :  { %v4886_v41 = vpop.f32.mrf.mxu0 }
 0x432   :  { %v1156_v62 = vadd.f32 %v4886_v41, %v1025_v22 }
 0x433   :  { %v1148_v49 = vpop.f32.mrf.mxu0 }
 0x434   :  { %v1149_v0 = vadd.f32 %v1148_v49, %v1019_v53 }
 0x435   :  { %v4889_v55 = vpop.f32.mrf.mxu0 }
 0x436   :  { %v1170_v63 = vadd.f32 %v4889_v55, %v1037_v59 }
 0x437   :  { %v1162_v57 = vpop.f32.mrf.mxu0 }
 0x438   :  { %v1163_v38 = vadd.f32 %v1162_v57, %v1031_v39 }
 0x439   :  { %v4892_v58 = vpop.f32.mrf.mxu0  ;;  %v4914_v2 = vpop.f32.mrf.mxu1 }
 0x43a   :  { %v1287_v40 = vadd.f32 %v4914_v2, %v1156_v62  ;;  %v1184_v41 = vadd.f32 %v4892_v58, %v1049_v30 }
 0x43b   :  { %v1176_v5 = vpop.f32.mrf.mxu0  ;;  %v1278_v7 = vpop.f32.mrf.mxu1 }
 0x43c   :  { %v1279_v51 = vadd.f32 %v1278_v7, %v1149_v0  ;;  %v1177_v24 = vadd.f32 %v1176_v5, %v1043_v12  ;;  %v6803_v7 = vsub.s32 0, %v5710_v50 }
 0x43d   :  { %v4895_v9 = vpop.f32.mrf.mxu0  ;;  %v4917_v10 = vpop.f32.mrf.mxu1 }
 0x43e   :  { %v1303_v4 = vadd.f32 %v4917_v10, %v1170_v63  ;;  %v73_v10 = vld [vmem:[#allocation5 + $0xc8] sm:$0xff]  ;;  %v1198_v6 = vadd.f32 %v4895_v9, %v1061_v11 }
 0x43f   :  { %v1190_v13 = vpop.f32.mrf.mxu0  ;;  %v1294_v17 = vpop.f32.mrf.mxu1 }
 0x440   :  { %v1191_v19 = vadd.f32 %v1190_v13, %v1055_v37  ;;  %v5536_v13 = vmov -1e+09   ;;  %v1295_v2 = vadd.f32 %v1294_v17, %v1163_v38 }
 0x441   :  { %v4920_v20 = vpop.f32.mrf.mxu1 }
 0x442   :  { %v1319_v55 = vadd.f32 %v4920_v20, %v1184_v41  ;;  %v75_v20 = vld [vmem:[#allocation5 + $0xd8] sm:$0xff] }
 0x443   :  { %v1310_v21 = vpop.f32.mrf.mxu1 }
 0x444   :  { %v1311_v17 = vadd.f32 %v1310_v21, %v1177_v24 }
 0x445   :  { %v6018_v25 = vpop.f32.mrf.mxu1 }
 0x446   :  { %v1335_v50 = vadd.f32 %v6018_v25, %v1198_v6 }
 0x447   :  { %v1326_v29 = vpop.f32.mrf.mxu1 }
 0x448   :  { %v6020_v31 = vadd.f32 %v1326_v29, %v1191_v19  ;;  %v103_v19 = vsel %vm102_vm8, 0.0, %v5536_v13 }
 0x449   :  { %v6029_v57 = vrot.slane %v103_v19, %v6803_v7 }
 0x452   :  { %v4942_v23 = vpop.f32.mrf.mxu0 }
 0x453   :  { %v1436_v3 = vadd.f32 %v4942_v23, %v1287_v40 }
 0x454   :  { %v1429_v18 = vpop.f32.mrf.mxu0 }
 0x455   :  { %v1430_v29 = vadd.f32 %v1429_v18, %v1279_v51  ;;  %v78_v51 = vld [vmem:[#allocation5 + $0xf0] sm:$0xff] }
 0x456   :  { %v4945_v52 = vpop.f32.mrf.mxu0 }
 0x457   :  { %v1448_v35 = vadd.f32 %v4945_v52, %v1303_v4 }
 0x458   :  { %v1441_v61 = vpop.f32.mrf.mxu0 }
 0x459   :  { %v1442_v15 = vadd.f32 %v1441_v61, %v1295_v2  ;;  %v80_v2 = vld [vmem:[#allocation5 + $0x100] sm:$0xff] }
 0x45a   :  { %v4948_v34 = vpop.f32.mrf.mxu0  ;;  %v4970_v37 = vpop.f32.mrf.mxu1 }
 0x45b   :  { %v1557_v56 = vadd.f32 %v4970_v37, %v1436_v3  ;;  %v1460_v22 = vadd.f32 %v4948_v34, %v1319_v55  ;;  %v77_v34 = vld [vmem:[#allocation5 + $0xe8] sm:$0xff] }
 0x45c   :  { %v1453_v14 = vpop.f32.mrf.mxu0  ;;  %v1550_v49 = vpop.f32.mrf.mxu1 }
 0x45d   :  { %v1597_v1 = vmul.f32 0.35355338, %v1557_v56  ;;  %v1551_v16 = vadd.f32 %v1550_v49, %v1430_v29  ;;  %v1454_v62 = vadd.f32 %v1453_v14, %v1311_v17 }
 0x45e   :  { %v4973_v42 = vpop.f32.mrf.mxu1  ;;  %v4951_v8 = vpop.f32.mrf.mxu0 }
 0x45f   :  { %v1605_v27 = vadd.f32 %v1597_v1, %v74_v60  ;;  %v1596_v58 = vmul.f32 0.35355338, %v1551_v16  ;;  %v1569_v54 = vadd.f32 %v4973_v42, %v1448_v35  ;;  %v1472_v21 = vadd.f32 %v4951_v8, %v1335_v50  ;;  %v79_v35 = vld [vmem:[#allocation5 + $0xf8] sm:$0xff] }
 0x460   :  { %v1562_v23 = vpop.f32.mrf.mxu1  ;;  %v1465_v40 = vpop.f32.mrf.mxu0 }
 0x461   :  { %v1604_v18 = vadd.f32 %v1596_v58, %v73_v10  ;;  %v1599_v28 = vmul.f32 0.35355338, %v1569_v54  ;;  %v1563_v5 = vadd.f32 %v1562_v23, %v1442_v15  ;;  %v1617_v53 = vadd.f32 %v6029_v57, %v1605_v27 }
 0x462   :  { %v4976_v32 = vpop.f32.mrf.mxu1  ;;  %v1466_v13 = vadd.f32 %v1465_v40, %v6020_v31 }
 0x463   :  { %v1598_v52 = vmul.f32 0.35355338, %v1563_v5  ;;  %v1581_v59 = vadd.f32 %v4976_v32, %v1460_v22  ;;  %v1616_v9 = vadd.f32 %v6029_v57, %v1604_v18  ;;  %v1607_v0 = vadd.f32 %v1599_v28, %v76_v26 }
 0x464   :  { %v1574_v61 = vpop.f32.mrf.mxu1  ;;  %v1628_v39 = vsel %vm1624_vm9, %v1617_v53, -inf }
 0x465   :  { %v1606_v63 = vadd.f32 %v1598_v52, %v75_v20  ;;  %v1601_v3 = vmul.f32 0.35355338, %v1581_v59  ;;  %v1575_v30 = vadd.f32 %v1574_v61, %v1454_v62  ;;  %1629 = vmax.xlane.f32.xlu0 %v1628_v39  ;;  %v1625_v25 = vsel %vm1624_vm9, %v1616_v9, -inf }
 0x466   :  { %v4979_v37 = vpop.f32.mrf.mxu1  ;;  %1626 = vmax.xlane.f32.xlu1 %v1625_v25  ;;  %v1619_v12 = vadd.f32 %v6029_v57, %v1607_v0 }
 0x467   :  { %v1600_v19 = vmul.f32 0.35355338, %v1575_v30  ;;  %v1593_v38 = vadd.f32 %v4979_v37, %v1472_v21  ;;  %v1618_v4 = vadd.f32 %v6029_v57, %v1606_v63  ;;  %v1609_v29 = vadd.f32 %v1601_v3, %v78_v51 }
 0x468   :  { %v1586_v56 = vpop.f32.mrf.mxu1  ;;  %v1634_v31 = vsel %vm1624_vm9, %v1619_v12, -inf }
 0x469   :  { %v1608_v41 = vadd.f32 %v1600_v19, %v77_v34  ;;  %v1603_v60 = vmul.f32 0.35355338, %v1593_v38  ;;  %v1587_v14 = vadd.f32 %v1586_v56, %v1466_v13  ;;  %v1631_v49 = vsel %vm1624_vm9, %v1618_v4, -inf }
 0x46a   :  { %1632 = vmax.xlane.f32.xlu0 %v1631_v49  ;;  %v1621_v7 = vadd.f32 %v6029_v57, %v1609_v29 }
 0x46b   :  { %v1602_v1 = vmul.f32 0.35355338, %v1587_v14  ;;  %v1620_v16 = vadd.f32 %v6029_v57, %v1608_v41  ;;  %v1611_v11 = vadd.f32 %v1603_v60, %v80_v2 }
 0x46c   :  { %v1640_v42 = vsel %vm1624_vm9, %v1621_v7, -inf }
 0x46d   :  { %v1610_v24 = vadd.f32 %v1602_v1, %v79_v35  ;;  %v1637_v55 = vsel %vm1624_vm9, %v1620_v16, -inf  ;;  %v1623_v15 = vadd.f32 %v6029_v57, %v1611_v11 }
 0x46e   :  { %1635 = vmax.xlane.f32.xlu0 %v1634_v31  ;;  %1638 = vmax.xlane.f32.xlu1 %v1637_v55 }
 0x46f   :  { %v6045_v10 = vadd.f32 %v6029_v57, %v1610_v24  ;;  %v1646_v27 = vsel %vm1624_vm9, %v1623_v15, -inf }
 0x471   :  { %v1643_v57 = vsel %vm1624_vm9, %v6045_v10, -inf }
 0x472   :  { %1641 = vmax.xlane.f32.xlu0 %v1640_v42 }
 0x476   :  { %1647 = vmax.xlane.f32.xlu0 %v1646_v27 }
 0x47f   :  { %1727 = vrot.lane.b32.xlu1 %v5690_v43, %s5537_s30 }
 0x483   :  { %1723 = vrot.lane.b32.xlu1 %v5696_v45, %s5537_s30 }
 0x48c   :  { %1725 = vrot.lane.b32.xlu0 %v5693_v44, %s5537_s30 }
 0x490   :  { %1717 = vrot.lane.b32.xlu0 %v5705_v48, %s5537_s30 }
 0x4a7   :  { %1644 = vmax.xlane.f32.xlu1 %v1643_v57 }
 0x4b8   :  { %1721 = vrot.lane.b32.xlu1 %v5701_v47, %s5537_s30 }
 0x4bc   :  { %1719 = vrot.lane.b32.xlu1 %v5699_v46, %s5537_s30 }
 0x4ee   :  { %v1630_v43 = vpop.xlane.xlu0 %1629 }
 0x4ef   :  { %v1650_v58 = vsub.f32 %v1617_v53, %v1630_v43  ;;  %v1627_v54 = vpop.xlane.xlu1 %1626 }
 0x4f0   :  { %v1649_v45 = vsub.f32 %v1616_v9, %v1627_v54 }
 0x4f1   :  { %v1659_v6 = vmul.f32 1.442695, %v1650_v58 }
 0x4f2   :  { %v1657_v17 = vmul.f32 1.442695, %v1649_v45 }
 0x4f3   :  { %5417 = vpow2.f32 %v1659_v6  ;;  %v1633_v44 = vpop.xlane.xlu0 %1632 }
 0x4f4   :  { %5419 = vpow2.f32 %v1657_v17  ;;  %v1651_v48 = vsub.f32 %v1618_v4, %v1633_v44 }
 0x4f6   :  { %v1661_v8 = vmul.f32 1.442695, %v1651_v48 }
 0x4f7   :  { %v1636_v23 = vpop.xlane.xlu0 %1635  ;;  %v1639_v22 = vpop.xlane.xlu1 %1638 }
 0x4f8   :  { %5421 = vpow2.f32 %v1661_v8  ;;  %v1652_v18 = vsub.f32 %v1619_v12, %v1636_v23  ;;  %v1653_v26 = vsub.f32 %v1620_v16, %v1639_v22 }
 0x4fa   :  { %v1663_v47 = vmul.f32 1.442695, %v1652_v18  ;;  %v1665_v28 = vmul.f32 1.442695, %v1653_v26 }
 0x4fb   :  { %v1642_v5 = vpop.xlane.xlu0 %1641  ;;  %v1728_v46 = vpop.permute.xlu1 %1727 }
 0x4fc   :  { %5423 = vpow2.f32 %v1663_v47  ;;  %v1654_v50 = vsub.f32 %v1621_v7, %v1642_v5  ;;  %v6064_v20 = vand.u32 4294901760, %v1728_v46 }
 0x4fd   :  { %5425 = vpow2.f32 %v1665_v28 }
 0x4fe   :  { %v1667_v32 = vmul.f32 1.442695, %v1654_v50  ;;  %v6067_v53 = vsub.f32 %v1728_v46, %v6064_v20  ;;  %4980 = vmatprep.subr.mxu0 %v6064_v20 }
 0x4ff   :  { %v1648_v62 = vpop.xlane.xlu0 %1647  ;;  %4981 = vmatpush3.msra.mxu0 %v6064_v20  ;;  %v1724_v52 = vpop.permute.xlu1 %1723 }
 0x500   :  { %v6071_v59 = vpop.eup %5417  ;;  %5427 = vpow2.f32 %v1667_v32  ;;  %v1656_v9 = vsub.f32 %v1623_v15, %v1648_v62  ;;  %v6073_v21 = vand.u32 4294901760, %v1724_v52  ;;  %v6076_v0 = vand.u32 4294901760, %v6067_v53 }
 0x501   :  { %v6078_v40 = vpop.eup %5419  ;;  %v1676_v61 = vsel %vm1624_vm9, %v6071_v59, 0.0 }
 0x502   :  { %v1671_v39 = vmul.f32 1.442695, %v1656_v9  ;;  %v6083_v63 = vsub.f32 %v1724_v52, %v6073_v21  ;;  %1677 = vadd.xlane.f32.xlu0 %v1676_v61  ;;  %v1673_v51 = vsel %vm1624_vm9, %v6078_v40, 0.0  ;;  %v1934_v3 = vsub.f32 %v6067_v53, %v6076_v0 }
 0x503   :  { %v1726_v30 = vpop.permute.xlu0 %1725  ;;  %1674 = vadd.xlane.f32.xlu1 %v1673_v51 }
 0x504   :  { %5429 = vpow2.f32 %v1671_v39  ;;  %v6089_v25 = vand.u32 4294901760, %v1726_v30  ;;  %v1935_v34 = vand.u32 4294901760, %v1934_v3  ;;  %v6100_v38 = vand.u32 4294901760, %v6083_v63 }
 0x505   :  { %v6091_v37 = vpop.eup %5421 }
 0x506   :  { %v6094_v13 = vsub.f32 %v1726_v30, %v6089_v25  ;;  %4982 = vmatprep.subr.mxu0 %v6089_v25  ;;  %5008 = vmatprep.subr.mxu1 %v1935_v34  ;;  %v1679_v19 = vsel %vm1624_vm9, %v6091_v37, 0.0  ;;  %v1948_v60 = vsub.f32 %v6083_v63, %v6100_v38 }
 0x507   :  { %4983 = vmatpush3.msra.mxu0 %v6089_v25  ;;  %5009 = vmatpush3.msra.mxu1 %v1935_v34  ;;  %v1718_v11 = vpop.permute.xlu0 %1717 }
 0x508   :  { %1680 = vadd.xlane.f32.xlu1 %v1679_v19  ;;  %4984 = vmatprep.subr.mxu0 %v6073_v21  ;;  %v6105_v4 = vand.u32 4294901760, %v6094_v13  ;;  %v1949_v1 = vand.u32 4294901760, %v1948_v60  ;;  %v6131_v7 = vand.u32 4294901760, %v1718_v11 }
 0x509   :  { %v6107_v29 = vpop.eup %5423  ;;  %4985 = vmatpush3.msra.mxu0 %v6073_v21 }
 0x50a   :  { %v6110_v56 = vpop.eup %5425  ;;  %v1682_v12 = vsel %vm1624_vm9, %v6107_v29, 0.0  ;;  %v1941_v41 = vsub.f32 %v6094_v13, %v6105_v4  ;;  %v6136_v57 = vsub.f32 %v1718_v11, %v6131_v7 }
 0x50b   :  { %1683 = vadd.xlane.f32.xlu0 %v1682_v12  ;;  %v1685_v14 = vsel %vm1624_vm9, %v6110_v56, 0.0 }
 0x50c   :  { %1686 = vadd.xlane.f32.xlu1 %v1685_v14  ;;  %v1942_v49 = vand.u32 4294901760, %v1941_v41  ;;  %v6155_v6 = vand.u32 4294901760, %v6136_v57 }
 0x50d   :  { %v6120_v2 = vpop.eup %5427 }
 0x50e   :  { %5010 = vmatprep.subr.mxu1 %v1942_v49  ;;  %v1688_v35 = vsel %vm1624_vm9, %v6120_v2, 0.0  ;;  %v1969_v8 = vsub.f32 %v6136_v57, %v6155_v6 }
 0x50f   :  { %1689 = vadd.xlane.f32.xlu0 %v1688_v35  ;;  %5011 = vmatpush3.msra.mxu1 %v1942_v49 }
 0x510   :  { %5012 = vmatprep.subr.mxu1 %v1949_v1  ;;  %v1970_v26 = vand.u32 4294901760, %v1969_v8 }
 0x511   :  { %v6124_v16 = vpop.eup %5429  ;;  %5013 = vmatpush3.msra.mxu1 %v1949_v1 }
 0x512   :  { %v1694_v31 = vsel %vm1624_vm9, %v6124_v16, 0.0 }
 0x513   :  { %1695 = vadd.xlane.f32.xlu0 %v1694_v31 }
 0x529   :  { %1713 = vrot.lane.b32.xlu0 %v5670_v36, %s5537_s30 }
 0x530   :  { %v1645_v24 = vpop.xlane.xlu1 %1644 }
 0x531   :  { %v1655_v55 = vsub.f32 %v6045_v10, %v1645_v24 }
 0x533   :  { %v1669_v42 = vmul.f32 1.442695, %v1655_v55 }
 0x534   :  { %v1722_v15 = vpop.permute.xlu1 %1721 }
 0x535   :  { %5431 = vpow2.f32 %v1669_v42  ;;  %v6133_v27 = vand.u32 4294901760, %v1722_v15 }
 0x537   :  { %v6139_v43 = vsub.f32 %v1722_v15, %v6133_v27  ;;  %4986 = vmatprep.subr.mxu0 %v6133_v27 }
 0x538   :  { %4987 = vmatpush3.msra.mxu0 %v6133_v27  ;;  %v1720_v36 = vpop.permute.xlu1 %1719 }
 0x539   :  { %v6143_v58 = vand.u32 4294901760, %v1720_v36  ;;  %v6146_v10 = vand.u32 4294901760, %v6139_v43 }
 0x53b   :  { %v6149_v54 = vsub.f32 %v1720_v36, %v6143_v58  ;;  %4988 = vmatprep.subr.mxu0 %v6143_v58  ;;  %v1955_v45 = vsub.f32 %v6139_v43, %v6146_v10 }
 0x53c   :  { %4989 = vmatpush3.msra.mxu0 %v6143_v58 }
 0x53d   :  { %4990 = vmatprep.subr.mxu0 %v6131_v7  ;;  %v1956_v17 = vand.u32 4294901760, %v1955_v45  ;;  %v6160_v44 = vand.u32 4294901760, %v6149_v54 }
 0x53e   :  { %4991 = vmatpush3.msra.mxu0 %v6131_v7 }
 0x53f   :  { %5014 = vmatprep.subr.mxu1 %v1956_v17  ;;  %v1962_v48 = vsub.f32 %v6149_v54, %v6160_v44 }
 0x540   :  { %5015 = vmatpush3.msra.mxu1 %v1956_v17 }
 0x541   :  { %v1963_v23 = vand.u32 4294901760, %v1962_v48 }
 0x542   :  { %v6167_v22 = vpop.eup %5431 }
 0x543   :  { %5016 = vmatprep.subr.mxu1 %v1963_v23  ;;  %v1691_v18 = vsel %vm1624_vm9, %v6167_v22, 0.0 }
 0x544   :  { %1692 = vadd.xlane.f32.xlu1 %v1691_v18  ;;  %5017 = vmatpush3.msra.mxu1 %v1963_v23 }
 0x545   :  { %5018 = vmatprep.subr.mxu1 %v1970_v26 }
 0x546   :  { %5019 = vmatpush3.msra.mxu1 %v1970_v26 }
 0x555   :  { %1715 = vrot.lane.b32.xlu1 %v5668_v33, %s5537_s30 }
 0x58b   :  { %v1678_v9 = vpop.xlane.xlu0 %1677 }
 0x58c   :  { %v1675_v47 = vpop.xlane.xlu1 %1674 }
 0x58d   :  { %5433 = vrcp.f32 %v1675_v47 }
 0x58e   :  { %5435 = vrcp.f32 %v1678_v9 }
 0x591   :  { %v1681_v61 = vpop.xlane.xlu1 %1680 }
 0x592   :  { %5437 = vrcp.f32 %v1681_v61 }
 0x595   :  { %v1687_v39 = vpop.xlane.xlu1 %1686 }
 0x59a   :  { %v5434_v28 = vpop.eup %5433 }
 0x59b   :  { %v1698_v5 = vmul.f32 %v5434_v28, %v6078_v40  ;;  %v1684_v40 = vpop.xlane.xlu0 %1683  ;;  %v5436_v3 = vpop.eup %5435 }
 0x59c   :  { %5439 = vrcp.f32 %v1684_v40  ;;  %v1700_v34 = vmul.f32 %v5436_v3, %v6071_v59 }
 0x59d   :  { %v1738_v46 = vsel %vm1624_vm9, %v1698_v5, 0  ;;  %5441 = vrcp.f32 %v1687_v39 }
 0x59e   :  { %v6175_v50 = vand.u32 4294901760, %v1738_v46  ;;  %v1741_v14 = vsel %vm1624_vm9, %v1700_v34, 0 }
 0x59f   :  { %v1690_v51 = vpop.xlane.xlu0 %1689  ;;  %v5438_v30 = vpop.eup %5437  ;;  %v6191_v11 = vand.u32 4294901760, %v1741_v14 }
 0x5a0   :  { %5024 = vmatprep.mubr.f32.mxu1 %v6175_v50  ;;  %v6179_v32 = vsub.f32 %v1738_v46, %v6175_v50  ;;  %5443 = vrcp.f32 %v1690_v51  ;;  %v1702_v12 = vmul.f32 %v5438_v30, %v6091_v37 }
 0x5a1   :  { %v6199_v15 = vsub.f32 %v1741_v14, %v6191_v11 }
 0x5a2   :  { %v1836_v62 = vand.u32 4294901760, %v6179_v32  ;;  %v1744_v35 = vsel %vm1624_vm9, %v1702_v12, 0 }
 0x5a3   :  { %v1696_v60 = vpop.xlane.xlu0 %1695  ;;  %v6193_v24 = vand.u32 4294901760, %v1744_v35  ;;  %v1846_v8 = vand.u32 4294901760, %v6199_v15 }
 0x5a4   :  { %v1837_v33 = vsub.f32 %v6179_v32, %v1836_v62  ;;  %5445 = vrcp.f32 %v1696_v60 }
 0x5a6   :  { %v1838_v52 = vand.u32 4294901760, %v1837_v33  ;;  %v1847_v33 = vsub.f32 %v6199_v15, %v1846_v8 }
 0x5a7   :  { %v1714_v42 = vpop.permute.xlu0 %1713 }
 0x5a8   :  { %4996 = vmatprep.mubr.f32.mxu0 %v1838_v52  ;;  %v6209_v17 = vand.u32 4294901760, %v1714_v42  ;;  %v1848_v30 = vand.u32 4294901760, %v1847_v33 }
 0x5a9   :  { %v5440_v19 = vpop.eup %5439 }
 0x5aa   :  { %v5442_v41 = vpop.eup %5441  ;;  %v1704_v49 = vmul.f32 %v5440_v19, %v6107_v29  ;;  %v6222_v47 = vsub.f32 %v1714_v42, %v6209_v17 }
 0x5ab   :  { %v1706_v1 = vmul.f32 %v5442_v41, %v6110_v56  ;;  %v6204_v56 = vsub.f32 %v1744_v35, %v6193_v24 }
 0x5ac   :  { %v1747_v59 = vsel %vm1624_vm9, %v1704_v49, 0  ;;  %v6241_v51 = vand.u32 4294901760, %v6222_v47 }
 0x5ad   :  { %v5444_v31 = vpop.eup %5443  ;;  %v1750_v37 = vsel %vm1624_vm9, %v1706_v1, 0  ;;  %v6201_v29 = vand.u32 4294901760, %v1747_v59  ;;  %v1856_v23 = vand.u32 4294901760, %v6204_v56 }
 0x5ae   :  { %v1708_v55 = vmul.f32 %v5444_v31, %v6120_v2  ;;  %v6206_v36 = vand.u32 4294901760, %v1750_v37  ;;  %v1983_v14 = vsub.f32 %v6222_v47, %v6241_v51 }
 0x5af   :  { %v6213_v2 = vsub.f32 %v1747_v59, %v6201_v29  ;;  %v1857_v9 = vsub.f32 %v6204_v56, %v1856_v23 }
 0x5b0   :  { %v1753_v45 = vsel %vm1624_vm9, %v1708_v55, 0  ;;  %v6217_v18 = vsub.f32 %v1750_v37, %v6206_v36  ;;  %v1984_v42 = vand.u32 4294901760, %v1983_v14 }
 0x5b1   :  { %v6219_v26 = vand.u32 4294901760, %v1753_v45  ;;  %v5446_v5 = vpop.eup %5445  ;;  %v1866_v52 = vand.u32 4294901760, %v6213_v2  ;;  %v1858_v12 = vand.u32 4294901760, %v1857_v9 }
 0x5b2   :  { %v1876_v61 = vand.u32 4294901760, %v6217_v18  ;;  %v1712_v3 = vmul.f32 %v5446_v5, %v6124_v16 }
 0x5b3   :  { %v6235_v40 = vsub.f32 %v1753_v45, %v6219_v26  ;;  %v1867_v34 = vsub.f32 %v6213_v2, %v1866_v52 }
 0x5b4   :  { %v1877_v41 = vsub.f32 %v6217_v18, %v1876_v61  ;;  %v1759_v49 = vsel %vm1624_vm9, %v1712_v3, 0 }
 0x5b5   :  { %v1886_v60 = vand.u32 4294901760, %v6235_v40  ;;  %v1868_v35 = vand.u32 4294901760, %v1867_v34  ;;  %v6267_v55 = vand.u32 4294901760, %v1759_v49 }
 0x5b6   :  { %v1878_v59 = vand.u32 4294901760, %v1877_v41  ;;  %v55_v41 = vld [vmem:[#allocation5 + $0x38] sm:$0xff] }
 0x5b7   :  { %v1887_v37 = vsub.f32 %v6235_v40, %v1886_v60 }
 0x5b9   :  { %v1888_v45 = vand.u32 4294901760, %v1887_v37 }
 0x5cd   :  { %v1693_v48 = vpop.xlane.xlu1 %1692 }
 0x5ce   :  { %5447 = vrcp.f32 %v1693_v48 }
 0x5d1   :  { %v1716_v28 = vpop.permute.xlu1 %1715 }
 0x5d2   :  { %v6224_v46 = vand.u32 4294901760, %v1716_v28 }
 0x5d4   :  { %v1974_v39 = vsub.f32 %v1716_v28, %v6224_v46  ;;  %4992 = vmatprep.subr.mxu0 %v6224_v46 }
 0x5d5   :  { %4993 = vmatpush3.msra.mxu0 %v6224_v46 }
 0x5d6   :  { %4994 = vmatprep.subr.mxu0 %v6209_v17  ;;  %v6248_v19 = vand.u32 4294901760, %v1974_v39 }
 0x5d7   :  { %4995 = vmatpush3.msra.mxu0 %v6209_v17 }
 0x5d8   :  { %4997 = vmatmul.mubr.f32.vlgmr.msra.gmra.mxu0 %v1848_v30  ;;  %5036 = vmatprep.subr.mxu0 %v6067_v53  ;;  %v1976_v16 = vsub.f32 %v1974_v39, %v6248_v19  ;;  %v56_v30 = vld [vmem:[#allocation5 + $0x40] sm:$0xff] }
 0x5d9   :  { %4999 = vmatprep.mubr.f32.mxu0 %v1858_v12  ;;  %5037 = vmatpush3.msra.mxu0 %v6067_v53  ;;  %v6409_v12 = vand.u32 4294901760, %v56_v30 }
 0x5da   :  { %5038 = vmatprep.subr.mxu0 %v6094_v13  ;;  %v1977_v1 = vand.u32 4294901760, %v1976_v16 }
 0x5db   :  { %v5448_v31 = vpop.eup %5447  ;;  %5039 = vmatpush3.msra.mxu0 %v6094_v13 }
 0x5dc   :  { %5000 = vmatmul.mubr.f32.gmra.mxu0 %v1868_v35  ;;  %5020 = vmatprep.subr.mxu1 %v1977_v1  ;;  %v1710_v53 = vmul.f32 %v5448_v31, %v6167_v22  ;;  %v6277_v22 = vsub.f32 %v1759_v49, %v6267_v55  ;;  %v6416_v49 = vsub.f32 %v56_v30, %v6409_v12  ;;  %v6418_v35 = vand.u32 4294901760, %v55_v41 }
 0x5dd   :  { %5040 = vmatprep.subr.mxu0 %v6083_v63  ;;  %5002 = vmatprep.mubr.f32.mxu0 %v1878_v59  ;;  %v54_v59 = vld [vmem:[#allocation5 + $0x30] sm:$0xff] }
 0x5de   :  { %5021 = vmatpush3.msra.mxu1 %v1977_v1  ;;  %5041 = vmatpush3.msra.mxu0 %v6083_v63  ;;  %v1756_v13 = vsel %vm1624_vm9, %v1710_v53, 0 }
 0x5df   :  { %5022 = vmatprep.subr.mxu1 %v1984_v42  ;;  %5042 = vmatprep.subr.mxu0 %v6139_v43  ;;  %v6273_v48 = vand.u32 4294901760, %v1756_v13 }
 0x5e0   :  { %5023 = vmatpush3.msra.mxu1 %v1984_v42  ;;  %5043 = vmatpush3.msra.mxu0 %v6139_v43  ;;  %v1906_v43 = vand.u32 4294901760, %v6277_v22  ;;  %v6430_v42 = vsub.f32 %v55_v41, %v6418_v35 }
 0x5e1   :  { %5003 = vmatmul.mubr.f32.gmra.mxu0 %v1888_v45  ;;  %5025 = vmatmul.mubr.f32.vlgmr.msra.gmra.mxu1 %v6191_v11  ;;  %v6281_v28 = vsub.f32 %v1756_v13, %v6273_v48 }
 0x5e2   :  { %5044 = vmatprep.subr.mxu0 %v6149_v54  ;;  %5064 = vmatprep.subr.mxu1 %v6064_v20 }
 0x5e3   :  { %5027 = vmatprep.mubr.f32.mxu1 %v6193_v24  ;;  %5045 = vmatpush3.msra.mxu0 %v6149_v54  ;;  %v1896_v63 = vand.u32 4294901760, %v6281_v28  ;;  %v1907_v54 = vsub.f32 %v6277_v22, %v1906_v43 }
 0x5e4   :  { %5065 = vmatpush3.msra.mxu1 %v6064_v20  ;;  %5046 = vmatprep.subr.mxu0 %v6136_v57 }
 0x5e5   :  { %5066 = vmatprep.subr.mxu1 %v6089_v25  ;;  %5047 = vmatpush3.msra.mxu0 %v6136_v57  ;;  %v1897_v5 = vsub.f32 %v6281_v28, %v1896_v63  ;;  %v1908_v33 = vand.u32 4294901760, %v1907_v54 }
 0x5e6   :  { %5067 = vmatpush3.msra.mxu1 %v6089_v25  ;;  %5048 = vmatprep.subr.mxu0 %v1974_v39 }
 0x5e7   :  { %5028 = vmatmul.mubr.f32.gmra.mxu1 %v6201_v29  ;;  %5068 = vmatprep.subr.mxu1 %v6073_v21  ;;  %v1898_v57 = vand.u32 4294901760, %v1897_v5 }
 0x5e8   :  { %5030 = vmatprep.mubr.f32.mxu1 %v6206_v36  ;;  %5049 = vmatpush3.msra.mxu0 %v1974_v39  ;;  %v57_v39 = vld [vmem:[#allocation5 + $0x48] sm:$0xff] }
 0x5e9   :  { %5069 = vmatpush3.msra.mxu1 %v6073_v21  ;;  %5050 = vmatprep.subr.mxu0 %v6222_v47 }
 0x5ea   :  { %5070 = vmatprep.subr.mxu1 %v6133_v27  ;;  %5051 = vmatpush3.msra.mxu0 %v6222_v47 }
 0x5eb   :  { %5071 = vmatpush3.msra.mxu1 %v6133_v27  ;;  %5092 = vmatprep.subr.mxu0 %v6076_v0 }
 0x5ec   :  { %5031 = vmatmul.mubr.f32.gmra.mxu1 %v6219_v26  ;;  %5072 = vmatprep.subr.mxu1 %v6143_v58 }
 0x5ed   :  { %5005 = vmatprep.mubr.f32.mxu0 %v1898_v57  ;;  %5033 = vmatprep.mubr.f32.mxu1 %v6273_v48 }
 0x5ee   :  { %5073 = vmatpush3.msra.mxu1 %v6143_v58  ;;  %5006 = vmatmul.mubr.f32.gmra.mxu0 %v1908_v33  ;;  %v6441_v33 = vand.u32 4294901760, %v6430_v42 }
 0x5ef   :  { %5074 = vmatprep.subr.mxu1 %v6131_v7  ;;  %5052 = vmatprep.mubr.f32.mxu0 %v6179_v32 }
 0x5f0   :  { %5075 = vmatpush3.msra.mxu1 %v6131_v7 }
 0x5f1   :  { %5034 = vmatmul.mubr.f32.gmra.mxu1 %v6267_v55  ;;  %5076 = vmatprep.subr.mxu1 %v6224_v46 }
 0x5f2   :  { %5077 = vmatpush3.msra.mxu1 %v6224_v46  ;;  %5080 = vmatprep.mubr.f32.mxu1 %v1836_v62 }
 0x5f3   :  { %5053 = vmatmul.mubr.f32.vlgmr.msra.gmra.mxu0 %v6199_v15  ;;  %5078 = vmatprep.subr.mxu1 %v6209_v17 }
 0x5f4   :  { %5093 = vmatpush3.msra.mxu0 %v6076_v0  ;;  %5055 = vmatprep.mubr.f32.mxu0 %v6204_v56 }
 0x5f5   :  { %5079 = vmatpush3.msra.mxu1 %v6209_v17  ;;  %5094 = vmatprep.subr.mxu0 %v6105_v4 }
 0x5f6   :  { %5081 = vmatmul.mubr.f32.vlgmr.msra.gmra.mxu1 %v1846_v8  ;;  %5095 = vmatpush3.msra.mxu0 %v6105_v4 }
 0x5f7   :  { %5120 = vmatprep.subr.mxu1 %v6064_v20  ;;  %5083 = vmatprep.mubr.f32.mxu1 %v1856_v23 }
 0x5f8   :  { %5096 = vmatprep.subr.mxu0 %v6100_v38  ;;  %5121 = vmatpush3.msra.mxu1 %v6064_v20 }
 0x5f9   :  { %5056 = vmatmul.mubr.f32.gmra.mxu0 %v6213_v2  ;;  %5122 = vmatprep.subr.mxu1 %v6089_v25 }
 0x5fa   :  { %5097 = vmatpush3.msra.mxu0 %v6100_v38  ;;  %5058 = vmatprep.mubr.f32.mxu0 %v6217_v18 }
 0x5fb   :  { %5098 = vmatprep.subr.mxu0 %v6146_v10  ;;  %5123 = vmatpush3.msra.mxu1 %v6089_v25 }
 0x5fc   :  { %5084 = vmatmul.mubr.f32.gmra.mxu1 %v1866_v52  ;;  %5099 = vmatpush3.msra.mxu0 %v6146_v10 }
 0x5fd   :  { %5124 = vmatprep.subr.mxu1 %v6073_v21  ;;  %5086 = vmatprep.mubr.f32.mxu1 %v1876_v61 }
 0x5fe   :  { %5100 = vmatprep.subr.mxu0 %v6160_v44  ;;  %5125 = vmatpush3.msra.mxu1 %v6073_v21 }
 0x5ff   :  { %5059 = vmatmul.mubr.f32.gmra.mxu0 %v6235_v40  ;;  %5126 = vmatprep.subr.mxu1 %v6133_v27 }
 0x600   :  { %5101 = vmatpush3.msra.mxu0 %v6160_v44  ;;  %5061 = vmatprep.mubr.f32.mxu0 %v6281_v28 }
 0x601   :  { %5102 = vmatprep.subr.mxu0 %v6155_v6  ;;  %5127 = vmatpush3.msra.mxu1 %v6133_v27 }
 0x602   :  { %5087 = vmatmul.mubr.f32.gmra.mxu1 %v1886_v60  ;;  %5103 = vmatpush3.msra.mxu0 %v6155_v6 }
 0x603   :  { %5128 = vmatprep.subr.mxu1 %v6143_v58  ;;  %5089 = vmatprep.mubr.f32.mxu1 %v1896_v63 }
 0x604   :  { %5104 = vmatprep.subr.mxu0 %v6248_v19  ;;  %5129 = vmatpush3.msra.mxu1 %v6143_v58 }
 0x605   :  { %5062 = vmatmul.mubr.f32.gmra.mxu0 %v6277_v22  ;;  %5130 = vmatprep.subr.mxu1 %v6131_v7  ;;  %v6435_v22 = vand.u32 4294901760, %v54_v59 }
 0x606   :  { %5105 = vmatpush3.msra.mxu0 %v6248_v19  ;;  %5108 = vmatprep.mubr.f32.mxu0 %v6175_v50 }
 0x607   :  { %5106 = vmatprep.subr.mxu0 %v6241_v51  ;;  %5131 = vmatpush3.msra.mxu1 %v6131_v7 }
 0x608   :  { %5090 = vmatmul.mubr.f32.gmra.mxu1 %v1906_v43  ;;  %5107 = vmatpush3.msra.mxu0 %v6241_v51  ;;  %v6401_v51 = vand.u32 4294901760, %v57_v39 }
 0x609   :  { %5132 = vmatprep.subr.mxu1 %v6224_v46  ;;  %5136 = vmatprep.mubr.f32.mxu1 %v6175_v50 }
 0x60a   :  { %5133 = vmatpush3.msra.mxu1 %v6224_v46  ;;  %5109 = vmatmul.mubr.f32.vlgmr.msra.gmra.mxu0 %v6191_v11  ;;  %v6406_v19 = vsub.f32 %v57_v39, %v6401_v51 }
 0x60b   :  { %5134 = vmatprep.subr.mxu1 %v6209_v17  ;;  %5111 = vmatprep.mubr.f32.mxu0 %v6193_v24 }
 0x60c   :  { %5135 = vmatpush3.msra.mxu1 %v6209_v17  ;;  %5148 = vmatprep.subr.mxu0 %v6401_v51  ;;  %v6413_v14 = vand.u32 4294901760, %v6406_v19 }
 0x60d   :  { %5137 = vmatmul.mubr.f32.vlgmr.msra.gmra.mxu1 %v6191_v11  ;;  %5149 = vmatpush3.msra.mxu0 %v6401_v51 }
 0x60e   :  { %5139 = vmatprep.mubr.f32.mxu1 %v6193_v24  ;;  %5112 = vmatmul.mubr.f32.gmra.mxu0 %v6201_v29  ;;  %v2753_v53 = vsub.f32 %v6406_v19, %v6413_v14 }
 0x60f   :  { %5114 = vmatprep.mubr.f32.mxu0 %v6206_v36  ;;  %5150 = vmatprep.subr.mxu0 %v6409_v12 }
 0x610   :  { %5151 = vmatpush3.msra.mxu0 %v6409_v12  ;;  %v2754_v43 = vand.u32 4294901760, %v2753_v53 }
 0x611   :  { %5140 = vmatmul.mubr.f32.gmra.mxu1 %v6201_v29  ;;  %5152 = vmatprep.subr.mxu0 %v6418_v35 }
 0x612   :  { %5142 = vmatprep.mubr.f32.mxu1 %v6206_v36  ;;  %5115 = vmatmul.mubr.f32.gmra.mxu0 %v6219_v26 }
 0x613   :  { %5117 = vmatprep.mubr.f32.mxu0 %v6273_v48  ;;  %5153 = vmatpush3.msra.mxu0 %v6418_v35 }
 0x614   :  { %5154 = vmatprep.subr.mxu0 %v6435_v22  ;;  %5159 = vmatprep.subr.mxu1 %v2754_v43 }
 0x615   :  { %5143 = vmatmul.mubr.f32.gmra.mxu1 %v6219_v26  ;;  %5155 = vmatpush3.msra.mxu0 %v6435_v22 }
 0x616   :  { %5145 = vmatprep.mubr.f32.mxu1 %v6273_v48  ;;  %5118 = vmatmul.mubr.f32.gmra.mxu0 %v6267_v55 }
 0x617   :  { %5160 = vmatpush3.msra.mxu1 %v2754_v43  ;;  %5170 = vmatprep.subr.mxu0 %v6406_v19 }
 0x619   :  { %5146 = vmatmul.mubr.f32.gmra.mxu1 %v6267_v55  ;;  %v6427_v55 = vand.u32 4294901760, %v6416_v49 }
 0x61b   :  { %v2760_v5 = vsub.f32 %v6416_v49, %v6427_v55 }
 0x698   :  { %v4998_v20 = vpop.f32.mrf.mxu0 }
 0x69a   :  { %v1840_v21 = vpop.f32.mrf.mxu0 }
 0x69c   :  { %v5001_v0 = vpop.f32.mrf.mxu0 }
 0x69e   :  { %v1860_v7 = vpop.f32.mrf.mxu0 }
 0x6a1   :  { %v5026_v25 = vpop.f32.mrf.mxu1  ;;  %v5004_v10 = vpop.f32.mrf.mxu0 }
 0x6a2   :  { %v2028_v38 = vadd.f32 %v5026_v25, %v4998_v20  ;;  %v6444_v20 = vsub.f32 %v54_v59, %v6435_v22 }
 0x6a3   :  { %v2021_v4 = vpop.f32.mrf.mxu1  ;;  %v1880_v44 = vpop.f32.mrf.mxu0 }
 0x6a4   :  { %v2022_v27 = vadd.f32 %v2021_v4, %v1840_v21  ;;  %v2761_v4 = vand.u32 4294901760, %v2760_v5 }
 0x6a6   :  { %5161 = vmatprep.subr.mxu1 %v2761_v4 }
 0x6a7   :  { %v5029_v58 = vpop.f32.mrf.mxu1  ;;  %5162 = vmatpush3.msra.mxu1 %v2761_v4 }
 0x6a8   :  { %v2040_v60 = vadd.f32 %v5029_v58, %v5001_v0  ;;  %v2767_v58 = vsub.f32 %v6430_v42, %v6441_v33 }
 0x6a9   :  { %v2033_v6 = vpop.f32.mrf.mxu1 }
 0x6aa   :  { %v2034_v1 = vadd.f32 %v2033_v6, %v1860_v7 }
 0x6ac   :  { %v5032_v50 = vpop.f32.mrf.mxu1 }
 0x6ad   :  { %v2052_v13 = vadd.f32 %v5032_v50, %v5004_v10  ;;  %v6453_v10 = vand.u32 4294901760, %v6444_v20 }
 0x6ae   :  { %v6391_v32 = vpop.f32.mrf.mxu0  ;;  %v2045_v62 = vpop.f32.mrf.mxu1 }
 0x6af   :  { %v2046_v54 = vadd.f32 %v2045_v62, %v1880_v44 }
 0x6b0   :  { %v6393_v11 = vpop.f32.mrf.mxu0 }
 0x6b1   :  { %v6395_v24 = vpop.f32.mrf.mxu1 }
 0x6b2   :  { %v2064_v6 = vadd.f32 %v6395_v24, %v6391_v32 }
 0x6b3   :  { %v6397_v15 = vpop.f32.mrf.mxu1  ;;  %v5054_v29 = vpop.f32.mrf.mxu0 }
 0x6b4   :  { %v2159_v56 = vadd.f32 %v5054_v29, %v2028_v38 }
 0x6b5   :  { %v2151_v36 = vpop.f32.mrf.mxu0 }
 0x6b6   :  { %v2152_v17 = vadd.f32 %v2151_v36, %v2022_v27  ;;  %v5082_v8 = vpop.f32.mrf.mxu1 }
 0x6b7   :  { %v2290_v2 = vadd.f32 %v5082_v8, %v2159_v56  ;;  %v2774_v8 = vsub.f32 %v6444_v20, %v6453_v10 }
 0x6b8   :  { %v2281_v23 = vpop.f32.mrf.mxu1 }
 0x6b9   :  { %v5057_v18 = vpop.f32.mrf.mxu0  ;;  %v2282_v26 = vadd.f32 %v2281_v23, %v2152_v17  ;;  %v2768_v17 = vand.u32 4294901760, %v2767_v58 }
 0x6ba   :  { %v2173_v37 = vadd.f32 %v5057_v18, %v2040_v60 }
 0x6bb   :  { %v2165_v47 = vpop.f32.mrf.mxu0  ;;  %5163 = vmatprep.subr.mxu1 %v2768_v17 }
 0x6bc   :  { %v5085_v46 = vpop.f32.mrf.mxu1  ;;  %v2166_v28 = vadd.f32 %v2165_v47, %v2034_v1  ;;  %5164 = vmatpush3.msra.mxu1 %v2768_v17 }
 0x6bd   :  { %v2306_v21 = vadd.f32 %v5085_v46, %v2173_v37  ;;  %v2775_v46 = vand.u32 4294901760, %v2774_v8 }
 0x6be   :  { %v2297_v52 = vpop.f32.mrf.mxu1 }
 0x6bf   :  { %v5060_v9 = vpop.f32.mrf.mxu0  ;;  %v2298_v44 = vadd.f32 %v2297_v52, %v2166_v28  ;;  %5165 = vmatprep.subr.mxu1 %v2775_v46 }
 0x6c0   :  { %v2187_v0 = vadd.f32 %v5060_v9, %v2052_v13  ;;  %5166 = vmatpush3.msra.mxu1 %v2775_v46 }
 0x6c1   :  { %v2179_v61 = vpop.f32.mrf.mxu0  ;;  %5181 = vmatprep.subr.mxu1 %v6401_v51 }
 0x6c2   :  { %v6399_v40 = vpop.f32.mrf.mxu1  ;;  %v2180_v50 = vadd.f32 %v2179_v61, %v2046_v54 }
 0x6c3   :  { %v2322_v23 = vadd.f32 %v6399_v40, %v2187_v0 }
 0x6c4   :  { %v6403_v3 = vpop.f32.mrf.mxu1 }
 0x6c5   :  { %v5063_v34 = vpop.f32.mrf.mxu0  ;;  %v2314_v52 = vadd.f32 %v6403_v3, %v2180_v50 }
 0x6c6   :  { %v2201_v18 = vadd.f32 %v5063_v34, %v2064_v6 }
 0x6c7   :  { %v2193_v16 = vpop.f32.mrf.mxu0 }
 0x6c8   :  { %v6421_v31 = vpop.f32.mrf.mxu1 }
 0x6ca   :  { %v6433_v45 = vpop.f32.mrf.mxu1  ;;  %v5110_v48 = vpop.f32.mrf.mxu0 }
 0x6cb   :  { %v2439_v63 = vadd.f32 %v5110_v48, %v2290_v2  ;;  %v2058_v2 = vadd.f32 %v6397_v15, %v6393_v11  ;;  %v2338_v11 = vadd.f32 %v6421_v31, %v2201_v18 }
 0x6cc   :  { %v2432_v57 = vpop.f32.mrf.mxu0 }
 0x6cd   :  { %v2433_v25 = vadd.f32 %v2432_v57, %v2282_v26  ;;  %v5138_v38 = vpop.f32.mrf.mxu1  ;;  %v2194_v9 = vadd.f32 %v2193_v16, %v2058_v2 }
 0x6ce   :  { %v6448_v7 = vadd.f32 %v5138_v38, %v2439_v63  ;;  %v5113_v27 = vpop.f32.mrf.mxu0 }
 0x6cf   :  { %v2451_v62 = vadd.f32 %v5113_v27, %v2306_v21  ;;  %v2553_v29 = vpop.f32.mrf.mxu1  ;;  %v2330_v3 = vadd.f32 %v6433_v45, %v2194_v9 }
 0x6d0   :  { %v2554_v56 = vadd.f32 %v2553_v29, %v2433_v25  ;;  %v2444_v36 = vpop.f32.mrf.mxu0 }
 0x6d1   :  { %v2445_v26 = vadd.f32 %v2444_v36, %v2298_v44  ;;  %v5141_v32 = vpop.f32.mrf.mxu1 }
 0x6d2   :  { %v2572_v24 = vadd.f32 %v5141_v32, %v2451_v62  ;;  %v5116_v47 = vpop.f32.mrf.mxu0 }
 0x6d3   :  { %v2463_v61 = vadd.f32 %v5116_v47, %v2322_v23  ;;  %v2565_v39 = vpop.f32.mrf.mxu1 }
 0x6d4   :  { %v2566_v30 = vadd.f32 %v2565_v39, %v2445_v26  ;;  %2603 = vrot.lane.b32.xlu0 %v2572_v24, %s5527_s16  ;;  %v2456_v41 = vpop.f32.mrf.mxu0  ;;  %v5457_v39 = vld [vmem:[#allocation2 + $0x8] sm:$0xff] }
 0x6d5   :  { %v2457_v15 = vadd.f32 %v2456_v41, %v2314_v52  ;;  %v5144_v40 = vpop.f32.mrf.mxu1 }
 0x6d6   :  { %v2584_v34 = vadd.f32 %v5144_v40, %v2463_v61  ;;  %2601 = vrot.lane.b32.xlu1 %v2566_v30, %s5527_s16  ;;  %v5119_v60 = vpop.f32.mrf.mxu0  ;;  %v4381_v61 = vld [vmem:[#allocation5 + $0x50] ss:$0 sm:$0xff] }
 0x6d7   :  { %v2475_v16 = vadd.f32 %v5119_v60, %v2338_v11  ;;  %v2577_v1 = vpop.f32.mrf.mxu1  ;;  %v5458_v11 = vld [vmem:[#allocation2] sm:$0xff] }
 0x6d8   :  { %v2578_v59 = vadd.f32 %v2577_v1, %v2457_v15  ;;  %2611 = vrot.lane.b32.xlu0 %v2584_v34, %s5533_s28  ;;  %v2468_v37 = vpop.f32.mrf.mxu0 }
 0x6d9   :  { %v2469_v53 = vadd.f32 %v2468_v37, %v2330_v3  ;;  %v5147_v13 = vpop.f32.mrf.mxu1 }
 0x6da   :  { %v2596_v31 = vadd.f32 %v5147_v13, %v2475_v16  ;;  %2609 = vrot.lane.b32.xlu1 %v2578_v59, %s5533_s28 }
 0x6db   :  { %v2589_v48 = vpop.f32.mrf.mxu1 }
 0x6dc   :  { %v2590_v28 = vadd.f32 %v2589_v48, %v2469_v53  ;;  %2619 = vrot.lane.b32.xlu0 %v2596_v31, %s5538_s4 }
 0x6de   :  { %2617 = vrot.lane.b32.xlu1 %v2590_v28, %s5538_s4 }
 0x746   :  { %v2604_v63 = vpop.permute.xlu0 %2603 }
 0x747   :  { %v2624_v54 = vsel %vm725_vm5, %v6448_v7, %v2604_v63 }
 0x748   :  { %v2602_v43 = vpop.permute.xlu1 %2601 }
 0x749   :  { %v2623_v0 = vsel %vm725_vm5, %v2554_v56, %v2602_v43  ;;  %v62_v43 = vld [vmem:[#allocation5 + $0x70] sm:$0xff] }
 0x74a   :  { %v2612_v5 = vpop.permute.xlu0 %2611 }
 0x74b   :  { %v2626_v57 = vsel %vm96_vm6, %v2624_v54, %v2612_v5  ;;  %v61_v5 = vld [vmem:[#allocation5 + $0x68] sm:$0xff]  ;;  %v6528_v54 = vand.u32 4294901760, %v62_v43 }
 0x74c   :  { %v2610_v45 = vpop.permute.xlu1 %2609 }
 0x74d   :  { %v2625_v38 = vsel %vm96_vm6, %v2623_v0, %v2610_v45  ;;  %v60_v45 = vld [vmem:[#allocation5 + $0x60] sm:$0xff]  ;;  %v6535_v0 = vsub.f32 %v62_v43, %v6528_v54  ;;  %v71_v43 = vld [vmem:[#allocation5 + $0xb8] sm:$0xff] }
 0x74e   :  { %v2620_v21 = vpop.permute.xlu0 %2619 }
 0x74f   :  { %v2629_v25 = vsel %vm2627_vm10, %v2626_v57, %v2620_v21  ;;  %v6530_v57 = vand.u32 4294901760, %v61_v5  ;;  %v6532_v21 = vand.u32 4294901760, %v60_v45 }
 0x750   :  { %v2634_v4 = vsel %vm98_vm0, %v2629_v25, 0  ;;  %v2618_v27 = vpop.permute.xlu1 %2617 }
 0x751   :  { %v2715_v58 = vand.u32 4294901760, %v2634_v4  ;;  %v2628_v6 = vsel %vm2627_vm10, %v2625_v38, %v2618_v27  ;;  %v6538_v25 = vsub.f32 %v61_v5, %v6530_v57  ;;  %v6541_v38 = vsub.f32 %v60_v45, %v6532_v21  ;;  %v70_v45 = vld [vmem:[#allocation5 + $0xb0] sm:$0xff] }
 0x752   :  { %v2631_v44 = vsel %vm98_vm0, %v2628_v6, 0  ;;  %v6612_v5 = vand.u32 4294901760, %v71_v43 }
 0x753   :  { %v2716_v50 = vsub.f32 %v2634_v4, %v2715_v58  ;;  %v2705_v62 = vand.u32 4294901760, %v2631_v44  ;;  %v6546_v4 = vand.u32 4294901760, %v6535_v0  ;;  %v6549_v27 = vand.u32 4294901760, %v6538_v25 }
 0x755   :  { %v2706_v29 = vsub.f32 %v2631_v44, %v2705_v62  ;;  %5167 = vmatprep.mubr.f32.mxu1 %v2705_v62  ;;  %v2717_v7 = vand.u32 4294901760, %v2716_v50  ;;  %v3351_v6 = vsub.f32 %v6535_v0, %v6546_v4  ;;  %v3358_v44 = vsub.f32 %v6538_v25, %v6549_v27 }
 0x756   :  { %5168 = vmatmul.mubr.f32.vlgmr.msra.gmra.mxu1 %v2715_v58 }
 0x757   :  { %5182 = vmatpush3.msra.mxu1 %v6401_v51  ;;  %v2707_v36 = vand.u32 4294901760, %v2706_v29  ;;  %v2718_v17 = vsub.f32 %v2716_v50, %v2717_v7 }
 0x758   :  { %5183 = vmatprep.subr.mxu1 %v6409_v12 }
 0x759   :  { %5184 = vmatpush3.msra.mxu1 %v6409_v12  ;;  %5189 = vmatprep.mubr.f32.mxu1 %v2707_v36  ;;  %v2708_v56 = vsub.f32 %v2706_v29, %v2707_v36  ;;  %v2719_v2 = vand.u32 4294901760, %v2718_v17  ;;  %v3359_v36 = vand.u32 4294901760, %v3358_v44 }
 0x75a   :  { %5185 = vmatprep.subr.mxu1 %v6418_v35 }
 0x75b   :  { %5186 = vmatpush3.msra.mxu1 %v6418_v35  ;;  %v2709_v8 = vand.u32 4294901760, %v2708_v56 }
 0x75c   :  { %5187 = vmatprep.subr.mxu1 %v6435_v22 }
 0x75d   :  { %5188 = vmatpush3.msra.mxu1 %v6435_v22  ;;  %5156 = vmatprep.mubr.f32.mxu0 %v2709_v8 }
 0x75e   :  { %5190 = vmatmul.mubr.f32.vlgmr.msra.gmra.mxu1 %v2717_v7  ;;  %5203 = vmatprep.subr.mxu1 %v6401_v51  ;;  %v3352_v7 = vand.u32 4294901760, %v3351_v6 }
 0x75f   :  { %5157 = vmatmul.mubr.f32.vlgmr.msra.gmra.mxu0 %v2719_v2  ;;  %5204 = vmatpush3.msra.mxu1 %v6401_v51 }
 0x760   :  { %5171 = vmatpush3.msra.mxu0 %v6406_v19  ;;  %5211 = vmatprep.mubr.f32.mxu1 %v2705_v62 }
 0x761   :  { %5172 = vmatprep.subr.mxu0 %v6416_v49  ;;  %5178 = vmatprep.mubr.f32.mxu0 %v2706_v29 }
 0x762   :  { %5205 = vmatprep.subr.mxu1 %v6409_v12  ;;  %5173 = vmatpush3.msra.mxu0 %v6416_v49 }
 0x763   :  { %5206 = vmatpush3.msra.mxu1 %v6409_v12  ;;  %5174 = vmatprep.subr.mxu0 %v6430_v42 }
 0x764   :  { %5207 = vmatprep.subr.mxu1 %v6418_v35  ;;  %5175 = vmatpush3.msra.mxu0 %v6430_v42 }
 0x765   :  { %5208 = vmatpush3.msra.mxu1 %v6418_v35  ;;  %5176 = vmatprep.subr.mxu0 %v6444_v20 }
 0x766   :  { %5209 = vmatprep.subr.mxu1 %v6435_v22  ;;  %5177 = vmatpush3.msra.mxu0 %v6444_v20 }
 0x767   :  { %5210 = vmatpush3.msra.mxu1 %v6435_v22  ;;  %5179 = vmatmul.mubr.f32.vlgmr.msra.gmra.mxu0 %v2716_v50 }
 0x768   :  { %5192 = vmatprep.subr.mxu0 %v6413_v14  ;;  %5212 = vmatmul.mubr.f32.vlgmr.msra.gmra.mxu1 %v2715_v58 }
 0x769   :  { %5193 = vmatpush3.msra.mxu0 %v6413_v14  ;;  %5200 = vmatprep.mubr.f32.mxu0 %v2705_v62  ;;  %v59_v62 = vld [vmem:[#allocation5 + $0x58] sm:$0xff] }
 0x76a   :  { %5194 = vmatprep.subr.mxu0 %v6427_v55  ;;  %v6563_v29 = vand.u32 4294901760, %v59_v62  ;;  %5225 = vmatprep.subr.mxu1 %v3352_v7 }
 0x76b   :  { %5195 = vmatpush3.msra.mxu0 %v6427_v55  ;;  %5226 = vmatpush3.msra.mxu1 %v3352_v7 }
 0x76c   :  { %5196 = vmatprep.subr.mxu0 %v6441_v33  ;;  %v6567_v56 = vsub.f32 %v59_v62, %v6563_v29  ;;  %5227 = vmatprep.subr.mxu1 %v3359_v36 }
 0x76d   :  { %5197 = vmatpush3.msra.mxu0 %v6441_v33  ;;  %5228 = vmatpush3.msra.mxu1 %v3359_v36 }
 0x76e   :  { %5198 = vmatprep.subr.mxu0 %v6453_v10  ;;  %v6572_v8 = vand.u32 4294901760, %v6567_v56 }
 0x76f   :  { %5199 = vmatpush3.msra.mxu0 %v6453_v10 }
 0x770   :  { %5201 = vmatmul.mubr.f32.vlgmr.msra.gmra.mxu0 %v2715_v58  ;;  %5214 = vmatprep.subr.mxu0 %v6528_v54  ;;  %v6552_v58 = vand.u32 4294901760, %v6541_v38  ;;  %v3372_v2 = vsub.f32 %v6567_v56, %v6572_v8 }
 0x771   :  { %5215 = vmatpush3.msra.mxu0 %v6528_v54 }
 0x772   :  { %5216 = vmatprep.subr.mxu0 %v6530_v57  ;;  %v3365_v50 = vsub.f32 %v6541_v38, %v6552_v58 }
 0x773   :  { %5217 = vmatpush3.msra.mxu0 %v6530_v57 }
 0x774   :  { %5218 = vmatprep.subr.mxu0 %v6532_v21  ;;  %v3366_v17 = vand.u32 4294901760, %v3365_v50  ;;  %v67_v50 = vld [vmem:[#allocation5 + $0x98] sm:$0xff] }
 0x775   :  { %5219 = vmatpush3.msra.mxu0 %v6532_v21 }
 0x776   :  { %5220 = vmatprep.subr.mxu0 %v6563_v29  ;;  %5229 = vmatprep.subr.mxu1 %v3366_v17 }
 0x777   :  { %5221 = vmatpush3.msra.mxu0 %v6563_v29  ;;  %5230 = vmatpush3.msra.mxu1 %v3366_v17  ;;  %v66_v17 = vld [vmem:[#allocation5 + $0x90] sm:$0xff] }
 0x778   :  { %5236 = vmatprep.subr.mxu0 %v6535_v0 }
 0x816   :  { %v5169_v19 = vpop.f32.mrf.mxu1 }
 0x818   :  { %v2812_v35 = vpop.f32.mrf.mxu1 }
 0x81e   :  { %v5191_v42 = vpop.f32.mrf.mxu1 }
 0x81f   :  { %v5158_v51 = vpop.f32.mrf.mxu0 }
 0x820   :  { %v2819_v14 = vadd.f32 %v5169_v19, %v5158_v51  ;;  %v2982_v18 = vpop.f32.mrf.mxu1  ;;  %v3373_v51 = vand.u32 4294901760, %v3372_v2 }
 0x821   :  { %v2711_v12 = vpop.f32.mrf.mxu0 }
 0x822   :  { %v2813_v20 = vadd.f32 %v2812_v35, %v2711_v12  ;;  %5231 = vmatprep.subr.mxu1 %v3373_v51 }
 0x823   :  { %5232 = vmatpush3.msra.mxu1 %v3373_v51 }
 0x824   :  { %5247 = vmatprep.subr.mxu1 %v6528_v54 }
 0x827   :  { %v5180_v49 = vpop.f32.mrf.mxu0 }
 0x828   :  { %v2906_v23 = vadd.f32 %v5180_v49, %v2819_v14  ;;  %v5213_v32 = vpop.f32.mrf.mxu1 }
 0x829   :  { %v2898_v22 = vpop.f32.mrf.mxu0 }
 0x82a   :  { %v2899_v55 = vadd.f32 %v2898_v22, %v2813_v20  ;;  %v2991_v26 = vadd.f32 %v5191_v42, %v2906_v23  ;;  %v3154_v9 = vpop.f32.mrf.mxu1 }
 0x82c   :  { %v2983_v47 = vadd.f32 %v2982_v18, %v2899_v55 }
 0x830   :  { %v5202_v33 = vpop.f32.mrf.mxu0 }
 0x831   :  { %v3080_v24 = vadd.f32 %v5202_v33, %v2991_v26 }
 0x832   :  { %v3073_v46 = vpop.f32.mrf.mxu0 }
 0x833   :  { %v3161_v10 = vadd.f32 %v5213_v32, %v3080_v24  ;;  %v3074_v52 = vadd.f32 %v3073_v46, %v2983_v47  ;;  %v4382_v46 = vld [vmem:[#allocation5 + $0x2] ss:$0 sm:$0xff] }
 0x835   :  { %v3165_v30 = vadd.f32 %v5457_v39, %v3161_v10  ;;  %v3155_v41 = vadd.f32 %v3154_v9, %v3074_v52  ;;  %v4383_v9 = vld [vmem:[#allocation5 + $0x3] ss:$0 sm:$0xff] }
 0x837   :  { %v3164_v15 = vadd.f32 %v5458_v11, %v3155_v41  ;;  %v6508_v40 = vadd.f32 %v4381_v61, %v3165_v30 }
 0x839   :  { %v3175_v34 = vsel %vm98_vm0, %v6508_v40, 0.0  ;;  %v6512_v60 = vadd.f32 %v4381_v61, %v3164_v15 }
 0x83a   :  { %3176 = vadd.xlane.f32.xlu0 %v3175_v34 }
 0x83b   :  { %v3172_v3 = vsel %vm98_vm0, %v6512_v60, 0.0 }
 0x83c   :  { %3173 = vadd.xlane.f32.xlu1 %v3172_v3 }
 0x8c3   :  { %v3177_v16 = vpop.xlane.xlu0 %3176 }
 0x8c4   :  { %v3179_v1 = vmul.f32 0.03125, %v3177_v16 }
 0x8c5   :  { %v3174_v59 = vpop.xlane.xlu1 %3173 }
 0x8c6   :  { %v3178_v37 = vmul.f32 0.03125, %v3174_v59  ;;  %v6517_v53 = vsub.f32 %v6508_v40, %v3179_v1 }
 0x8c8   :  { %v6520_v13 = vsub.f32 %v6512_v60, %v3178_v37  ;;  %v3183_v28 = vmul.f32 %v6517_v53, %v6517_v53  ;;  %v3197_v39 = vmul.f32 %v4382_v46, %v6517_v53 }
 0x8ca   :  { %v3182_v31 = vmul.f32 %v6520_v13, %v6520_v13  ;;  %v3187_v63 = vsel %vm98_vm0, %v3183_v28, 0.0  ;;  %v3196_v10 = vmul.f32 %v4382_v46, %v6520_v13 }
 0x8cc   :  { %v3184_v48 = vsel %vm98_vm0, %v3182_v31, 0.0 }
 0x8cd   :  { %3185 = vadd.xlane.f32.xlu0 %v3184_v48 }
 0x8d1   :  { %3188 = vadd.xlane.f32.xlu0 %v3187_v63 }
 0x956   :  { %v3186_v19 = vpop.xlane.xlu0 %3185 }
 0x957   :  { %v3190_v12 = vmul.f32 0.032258064, %v3186_v19  ;;  %v6660_v19 = vand.u32 4294901760, %v66_v17 }
 0x959   :  { %5449 = vrsqrt.f32 %v3190_v12  ;;  %vm3200_vm11 = vcmp.eq.f32.partialorder %v3190_v12, inf  ;;  %v3203_v22 = vand.u32 2147483648, %v3190_v12  ;;  %vm3202_vm12 = vcmp.eq.f32.partialorder %v3190_v12, 0.0 }
 0x95a   :  { %v3189_v49 = vpop.xlane.xlu0 %3188 }
 0x95b   :  { %v3191_v35 = vmul.f32 0.032258064, %v3189_v49  ;;  %v65_v49 = vld [vmem:[#allocation5 + $0x88] sm:$0xff] }
 0x95d   :  { %5451 = vrsqrt.f32 %v3191_v35  ;;  %vm3207_vm13 = vcmp.eq.f32.partialorder %v3191_v35, inf  ;;  %v3210_v32 = vand.u32 2147483648, %v3191_v35  ;;  %vm3209_vm14 = vcmp.eq.f32.partialorder %v3191_v35, 0.0 }
 0x966   :  { %v5450_v14 = vpop.eup %5449 }
 0x967   :  { %v3199_v42 = vmul.f32 %v5450_v14, %v3190_v12 }
 0x969   :  { %v3201_v20 = vsel %vm3200_vm11, %v3190_v12, %v3199_v42  ;;  %v6669_v42 = vsub.f32 %v66_v17, %v6660_v19 }
 0x96a   :  { %v5452_v23 = vpop.eup %5451  ;;  %v3204_v55 = vsel %vm3202_vm12, %v3203_v22, %v3201_v20  ;;  %v6671_v22 = vand.u32 4294901760, %v65_v49 }
 0x96b   :  { %v3212_v18 = vadd.f32 1e-06, %v3204_v55  ;;  %v3206_v26 = vmul.f32 %v5452_v23, %v3191_v35  ;;  %v64_v23 = vld [vmem:[#allocation5 + $0x80] sm:$0xff] }
 0x96d   :  { %5453 = vrcp.f32 %v3212_v18  ;;  %v3208_v33 = vsel %vm3207_vm13, %v3191_v35, %v3206_v26  ;;  %v6679_v18 = vand.u32 4294901760, %v6669_v42  ;;  %v6682_v26 = vsub.f32 %v65_v49, %v6671_v22 }
 0x96e   :  { %v3211_v24 = vsel %vm3209_vm14, %v3210_v32, %v3208_v33  ;;  %v6684_v32 = vand.u32 4294901760, %v64_v23 }
 0x96f   :  { %v3213_v47 = vadd.f32 1e-06, %v3211_v24  ;;  %v3918_v24 = vsub.f32 %v6669_v42, %v6679_v18 }
 0x970   :  { %v6696_v46 = vsub.f32 %v64_v23, %v6684_v32 }
 0x971   :  { %5455 = vrcp.f32 %v3213_v47  ;;  %v6693_v47 = vand.u32 4294901760, %v6682_v26 }
 0x97a   :  { %v5454_v52 = vpop.eup %5453 }
 0x97b   :  { %v3215_v61 = vmul.f32 %v5454_v52, %v3196_v10  ;;  %v3919_v52 = vand.u32 4294901760, %v3918_v24 }
 0x97d   :  { %v3222_v30 = vadd.f32 %v4383_v9, %v3215_v61  ;;  %v6703_v61 = vand.u32 4294901760, %v6696_v46 }
 0x97e   :  { %v5456_v41 = vpop.eup %5455 }
 0x97f   :  { %v3229_v11 = vsel %vm98_vm0, %v3222_v30, 0  ;;  %v3217_v15 = vmul.f32 %v5456_v41, %v3197_v39  ;;  %v3932_v30 = vsub.f32 %v6696_v46, %v6703_v61 }
 0x980   :  { %v3303_v34 = vand.u32 4294901760, %v3229_v11 }
 0x981   :  { %v3223_v3 = vadd.f32 %v4383_v9, %v3217_v15  ;;  %v3925_v9 = vsub.f32 %v6682_v26, %v6693_v47  ;;  %v3933_v41 = vand.u32 4294901760, %v3932_v30  ;;  %v4384_v15 = vld [vmem:[#allocation5 + $0x78] ss:$0 sm:$0xff] }
 0x982   :  { %5233 = vmatprep.mubr.f32.mxu1 %v3303_v34  ;;  %v3304_v16 = vsub.f32 %v3229_v11, %v3303_v34 }
 0x983   :  { %v3232_v1 = vsel %vm98_vm0, %v3223_v3, 0  ;;  %v3926_v39 = vand.u32 4294901760, %v3925_v9 }
 0x984   :  { %v3313_v59 = vand.u32 4294901760, %v3232_v1  ;;  %v3305_v37 = vand.u32 4294901760, %v3304_v16 }
 0x986   :  { %v3314_v31 = vsub.f32 %v3232_v1, %v3313_v59  ;;  %5234 = vmatmul.mubr.f32.vlgmr.msra.gmra.mxu1 %v3313_v59  ;;  %v3306_v13 = vsub.f32 %v3304_v16, %v3305_v37 }
 0x987   :  { %5248 = vmatpush3.msra.mxu1 %v6528_v54  ;;  %5255 = vmatprep.mubr.f32.mxu1 %v3305_v37 }
 0x988   :  { %5249 = vmatprep.subr.mxu1 %v6530_v57  ;;  %v3307_v53 = vand.u32 4294901760, %v3306_v13  ;;  %v3315_v48 = vand.u32 4294901760, %v3314_v31 }
 0x989   :  { %5250 = vmatpush3.msra.mxu1 %v6530_v57 }
 0x98a   :  { %5251 = vmatprep.subr.mxu1 %v6532_v21  ;;  %5222 = vmatprep.mubr.f32.mxu0 %v3307_v53  ;;  %v3316_v28 = vsub.f32 %v3314_v31, %v3315_v48 }
 0x98b   :  { %5252 = vmatpush3.msra.mxu1 %v6532_v21 }
 0x98c   :  { %5253 = vmatprep.subr.mxu1 %v6563_v29  ;;  %v3317_v63 = vand.u32 4294901760, %v3316_v28 }
 0x98d   :  { %5254 = vmatpush3.msra.mxu1 %v6563_v29 }
 0x98e   :  { %5256 = vmatmul.mubr.f32.vlgmr.msra.gmra.mxu1 %v3315_v48  ;;  %5269 = vmatprep.subr.mxu1 %v6528_v54 }
 0x98f   :  { %5223 = vmatmul.mubr.f32.vlgmr.msra.gmra.mxu0 %v3317_v63  ;;  %5270 = vmatpush3.msra.mxu1 %v6528_v54  ;;  %v6615_v54 = vsub.f32 %v71_v43, %v6612_v5 }
 0x990   :  { %5237 = vmatpush3.msra.mxu0 %v6535_v0  ;;  %5277 = vmatprep.mubr.f32.mxu1 %v3303_v34 }
 0x991   :  { %5238 = vmatprep.subr.mxu0 %v6538_v25  ;;  %5244 = vmatprep.mubr.f32.mxu0 %v3304_v16  ;;  %v6622_v0 = vand.u32 4294901760, %v6615_v54 }
 0x992   :  { %5271 = vmatprep.subr.mxu1 %v6530_v57  ;;  %5239 = vmatpush3.msra.mxu0 %v6538_v25 }
 0x993   :  { %5272 = vmatpush3.msra.mxu1 %v6530_v57  ;;  %5240 = vmatprep.subr.mxu0 %v6541_v38  ;;  %v6617_v57 = vand.u32 4294901760, %v70_v45 }
 0x994   :  { %5273 = vmatprep.subr.mxu1 %v6532_v21  ;;  %5241 = vmatpush3.msra.mxu0 %v6541_v38 }
 0x995   :  { %5274 = vmatpush3.msra.mxu1 %v6532_v21  ;;  %5242 = vmatprep.subr.mxu0 %v6567_v56  ;;  %v69_v21 = vld [vmem:[#allocation5 + $0xa8] sm:$0xff]  ;;  %v6625_v25 = vsub.f32 %v70_v45, %v6617_v57 }
 0x996   :  { %5275 = vmatprep.subr.mxu1 %v6563_v29  ;;  %5243 = vmatpush3.msra.mxu0 %v6567_v56  ;;  %v6627_v38 = vand.u32 4294901760, %v69_v21  ;;  %v6652_v56 = vand.u32 4294901760, %v67_v50 }
 0x997   :  { %5276 = vmatpush3.msra.mxu1 %v6563_v29  ;;  %5245 = vmatmul.mubr.f32.vlgmr.msra.gmra.mxu0 %v3314_v31 }
 0x998   :  { %5258 = vmatprep.subr.mxu0 %v6546_v4  ;;  %5278 = vmatmul.mubr.f32.vlgmr.msra.gmra.mxu1 %v3313_v59  ;;  %v6637_v6 = vsub.f32 %v69_v21, %v6627_v38  ;;  %v6663_v12 = vsub.f32 %v67_v50, %v6652_v56 }
 0x999   :  { %5259 = vmatpush3.msra.mxu0 %v6546_v4  ;;  %5266 = vmatprep.mubr.f32.mxu0 %v3303_v34  ;;  %v68_v4 = vld [vmem:[#allocation5 + $0xa0] sm:$0xff] }
 0x99a   :  { %5260 = vmatprep.subr.mxu0 %v6549_v27  ;;  %v6639_v44 = vand.u32 4294901760, %v68_v4  ;;  %v6646_v7 = vand.u32 4294901760, %v6637_v6  ;;  %v6675_v20 = vand.u32 4294901760, %v6663_v12 }
 0x99b   :  { %5261 = vmatpush3.msra.mxu0 %v6549_v27  ;;  %v3883_v27 = vsub.f32 %v6615_v54, %v6622_v0 }
 0x99c   :  { %5262 = vmatprep.subr.mxu0 %v6552_v58  ;;  %v6649_v36 = vsub.f32 %v68_v4, %v6639_v44  ;;  %v3897_v2 = vsub.f32 %v6637_v6, %v6646_v7  ;;  %v3911_v33 = vsub.f32 %v6663_v12, %v6675_v20 }
 0x99d   :  { %5263 = vmatpush3.msra.mxu0 %v6552_v58  ;;  %v6634_v58 = vand.u32 4294901760, %v6625_v25  ;;  %v3884_v62 = vand.u32 4294901760, %v3883_v27 }
 0x99e   :  { %5264 = vmatprep.subr.mxu0 %v6572_v8  ;;  %v6658_v51 = vand.u32 4294901760, %v6649_v36  ;;  %v3898_v35 = vand.u32 4294901760, %v3897_v2  ;;  %v3912_v10 = vand.u32 4294901760, %v3911_v33 }
 0x99f   :  { %5265 = vmatpush3.msra.mxu0 %v6572_v8  ;;  %v3890_v29 = vsub.f32 %v6625_v25, %v6634_v58  ;;  %5299 = vmatprep.subr.mxu1 %v3884_v62 }
 0x9a0   :  { %5267 = vmatmul.mubr.f32.vlgmr.msra.gmra.mxu0 %v3313_v59  ;;  %5280 = vmatprep.subr.mxu0 %v6612_v5  ;;  %v3904_v14 = vsub.f32 %v6649_v36, %v6658_v51 }
 0x9a1   :  { %5281 = vmatpush3.msra.mxu0 %v6612_v5  ;;  %v3891_v8 = vand.u32 4294901760, %v3890_v29  ;;  %5300 = vmatpush3.msra.mxu1 %v3884_v62 }
 0x9a2   :  { %5282 = vmatprep.subr.mxu0 %v6617_v57  ;;  %v3905_v55 = vand.u32 4294901760, %v3904_v14 }
 0x9a3   :  { %5283 = vmatpush3.msra.mxu0 %v6617_v57  ;;  %5301 = vmatprep.subr.mxu1 %v3891_v8 }
 0x9a4   :  { %5284 = vmatprep.subr.mxu0 %v6627_v38  ;;  %5302 = vmatpush3.msra.mxu1 %v3891_v8 }
 0x9a5   :  { %5285 = vmatpush3.msra.mxu0 %v6627_v38  ;;  %5303 = vmatprep.subr.mxu1 %v3898_v35 }
 0x9a6   :  { %5286 = vmatprep.subr.mxu0 %v6639_v44  ;;  %5304 = vmatpush3.msra.mxu1 %v3898_v35 }
 0x9a7   :  { %5287 = vmatpush3.msra.mxu0 %v6639_v44  ;;  %5305 = vmatprep.subr.mxu1 %v3905_v55 }
 0x9a8   :  { %5288 = vmatprep.subr.mxu0 %v6652_v56  ;;  %5306 = vmatpush3.msra.mxu1 %v3905_v55 }
 0x9a9   :  { %5289 = vmatpush3.msra.mxu0 %v6652_v56  ;;  %5307 = vmatprep.subr.mxu1 %v3912_v10 }
 0x9aa   :  { %5290 = vmatprep.subr.mxu0 %v6660_v19  ;;  %5308 = vmatpush3.msra.mxu1 %v3912_v10 }
 0x9ab   :  { %5291 = vmatpush3.msra.mxu0 %v6660_v19  ;;  %5309 = vmatprep.subr.mxu1 %v3919_v52 }
 0x9ac   :  { %5292 = vmatprep.subr.mxu0 %v6671_v22  ;;  %5310 = vmatpush3.msra.mxu1 %v3919_v52 }
 0x9ad   :  { %5293 = vmatpush3.msra.mxu0 %v6671_v22  ;;  %5311 = vmatprep.subr.mxu1 %v3926_v39 }
 0x9ae   :  { %5294 = vmatprep.subr.mxu0 %v6684_v32  ;;  %5312 = vmatpush3.msra.mxu1 %v3926_v39 }
 0x9af   :  { %5295 = vmatpush3.msra.mxu0 %v6684_v32  ;;  %5313 = vmatprep.subr.mxu1 %v3933_v41 }
 0x9b0   :  { %5318 = vmatprep.subr.mxu0 %v6615_v54  ;;  %5314 = vmatpush3.msra.mxu1 %v3933_v41 }
 0x9b1   :  { %5337 = vmatprep.subr.mxu1 %v6612_v5 }
 0xa46   :  { %v5235_v34 = vpop.f32.mrf.mxu1 }
 0xa48   :  { %v3410_v37 = vpop.f32.mrf.mxu1 }
 0xa4e   :  { %v5257_v13 = vpop.f32.mrf.mxu1 }
 0xa4f   :  { %v5224_v11 = vpop.f32.mrf.mxu0 }
 0xa50   :  { %v3320_v16 = vadd.f32 %v5224_v11, %v4384_v15  ;;  %v3580_v43 = vpop.f32.mrf.mxu1 }
 0xa51   :  { %v3309_v3 = vpop.f32.mrf.mxu0 }
 0xa52   :  { %v3310_v1 = vadd.f32 %v4384_v15, %v3309_v3  ;;  %v3417_v31 = vadd.f32 %v5235_v34, %v3320_v16 }
 0xa54   :  { %v3411_v28 = vadd.f32 %v3410_v37, %v3310_v1 }
 0xa57   :  { %v5246_v59 = vpop.f32.mrf.mxu0 }
 0xa58   :  { %v3504_v48 = vadd.f32 %v5246_v59, %v3417_v31  ;;  %v5279_v21 = vpop.f32.mrf.mxu1 }
 0xa59   :  { %v3496_v53 = vpop.f32.mrf.mxu0 }
 0xa5a   :  { %v3497_v63 = vadd.f32 %v3496_v53, %v3411_v28  ;;  %v3589_v45 = vadd.f32 %v5257_v13, %v3504_v48  ;;  %v3752_v8 = vpop.f32.mrf.mxu1 }
 0xa5c   :  { %v3581_v50 = vadd.f32 %v3580_v43, %v3497_v63 }
 0xa60   :  { %v5268_v4 = vpop.f32.mrf.mxu0 }
 0xa61   :  { %v3678_v27 = vadd.f32 %v5268_v4, %v3589_v45 }
 0xa62   :  { %v3671_v62 = vpop.f32.mrf.mxu0 }
 0xa63   :  { %v3759_v29 = vadd.f32 %v5279_v21, %v3678_v27  ;;  %v3672_v17 = vadd.f32 %v3671_v62, %v3581_v50 }
 0xa65   :  { %v3763_v2 = vmax.f32 %v3759_v29, 0.0  ;;  %v3753_v49 = vadd.f32 %v3752_v8, %v3672_v17 }
 0xa67   :  { %v3768_v35 = vsel %vm1624_vm9, %v3763_v2, 0  ;;  %v3762_v14 = vmax.f32 %v3753_v49, 0.0 }
 0xa68   :  { %v6711_v23 = vand.u32 4294901760, %v3768_v35 }
 0xa69   :  { %v3765_v55 = vsel %vm1624_vm9, %v3762_v14, 0 }
 0xa6a   :  { %v3854_v33 = vsub.f32 %v3768_v35, %v6711_v23  ;;  %v3843_v24 = vand.u32 4294901760, %v3765_v55 }
 0xa6c   :  { %v3844_v10 = vsub.f32 %v3765_v55, %v3843_v24  ;;  %5315 = vmatprep.mubr.f32.mxu1 %v3843_v24  ;;  %v3855_v52 = vand.u32 4294901760, %v3854_v33 }
 0xa6d   :  { %5316 = vmatmul.mubr.f32.vlgmr.msra.gmra.mxu1 %v6711_v23 }
 0xa6e   :  { %5338 = vmatpush3.msra.mxu1 %v6612_v5  ;;  %v3845_v9 = vand.u32 4294901760, %v3844_v10  ;;  %v3856_v39 = vsub.f32 %v3854_v33, %v3855_v52 }
 0xa6f   :  { %5339 = vmatprep.subr.mxu1 %v6617_v57 }
 0xa70   :  { %5340 = vmatpush3.msra.mxu1 %v6617_v57  ;;  %5353 = vmatprep.mubr.f32.mxu1 %v3845_v9  ;;  %v3846_v30 = vsub.f32 %v3844_v10, %v3845_v9  ;;  %v3857_v11 = vand.u32 4294901760, %v3856_v39 }
 0xa71   :  { %5341 = vmatprep.subr.mxu1 %v6627_v38 }
 0xa72   :  { %5342 = vmatpush3.msra.mxu1 %v6627_v38  ;;  %v3847_v41 = vand.u32 4294901760, %v3846_v30 }
 0xa73   :  { %5343 = vmatprep.subr.mxu1 %v6639_v44 }
 0xa74   :  { %5344 = vmatpush3.msra.mxu1 %v6639_v44  ;;  %5296 = vmatprep.mubr.f32.mxu0 %v3847_v41 }
 0xa75   :  { %5345 = vmatprep.subr.mxu1 %v6652_v56  ;;  %5297 = vmatmul.mubr.f32.vlgmr.msra.gmra.mxu0 %v3857_v11 }
 0xa76   :  { %5319 = vmatpush3.msra.mxu0 %v6615_v54  ;;  %5346 = vmatpush3.msra.mxu1 %v6652_v56 }
 0xa77   :  { %5320 = vmatprep.subr.mxu0 %v6625_v25  ;;  %5334 = vmatprep.mubr.f32.mxu0 %v3844_v10 }
 0xa78   :  { %5347 = vmatprep.subr.mxu1 %v6660_v19  ;;  %5321 = vmatpush3.msra.mxu0 %v6625_v25 }
 0xa79   :  { %5348 = vmatpush3.msra.mxu1 %v6660_v19  ;;  %5322 = vmatprep.subr.mxu0 %v6637_v6 }
 0xa7a   :  { %5349 = vmatprep.subr.mxu1 %v6671_v22  ;;  %5323 = vmatpush3.msra.mxu0 %v6637_v6 }
 0xa7b   :  { %5350 = vmatpush3.msra.mxu1 %v6671_v22  ;;  %5324 = vmatprep.subr.mxu0 %v6649_v36 }
 0xa7c   :  { %5351 = vmatprep.subr.mxu1 %v6684_v32  ;;  %5325 = vmatpush3.msra.mxu0 %v6649_v36 }
 0xa7d   :  { %5352 = vmatpush3.msra.mxu1 %v6684_v32  ;;  %5326 = vmatprep.subr.mxu0 %v6663_v12 }
 0xa7e   :  { %5354 = vmatmul.mubr.f32.vlgmr.msra.gmra.mxu1 %v3855_v52  ;;  %5375 = vmatprep.subr.mxu1 %v6612_v5 }
 0xa7f   :  { %5327 = vmatpush3.msra.mxu0 %v6663_v12  ;;  %5376 = vmatpush3.msra.mxu1 %v6612_v5 }
 0xa80   :  { %5391 = vmatprep.mubr.f32.mxu1 %v3843_v24  ;;  %5328 = vmatprep.subr.mxu0 %v6669_v42 }
 0xa81   :  { %5377 = vmatprep.subr.mxu1 %v6617_v57  ;;  %5329 = vmatpush3.msra.mxu0 %v6669_v42 }
 0xa82   :  { %5378 = vmatpush3.msra.mxu1 %v6617_v57  ;;  %5330 = vmatprep.subr.mxu0 %v6682_v26 }
 0xa83   :  { %5379 = vmatprep.subr.mxu1 %v6627_v38  ;;  %5331 = vmatpush3.msra.mxu0 %v6682_v26 }
 0xa84   :  { %5380 = vmatpush3.msra.mxu1 %v6627_v38  ;;  %5332 = vmatprep.subr.mxu0 %v6696_v46 }
 0xa85   :  { %5381 = vmatprep.subr.mxu1 %v6639_v44  ;;  %5333 = vmatpush3.msra.mxu0 %v6696_v46 }
 0xa86   :  { %5382 = vmatpush3.msra.mxu1 %v6639_v44  ;;  %5335 = vmatmul.mubr.f32.vlgmr.msra.gmra.mxu0 %v3854_v33 }
 0xa87   :  { %5356 = vmatprep.subr.mxu0 %v6622_v0  ;;  %5383 = vmatprep.subr.mxu1 %v6652_v56 }
 0xa88   :  { %5357 = vmatpush3.msra.mxu0 %v6622_v0  ;;  %5372 = vmatprep.mubr.f32.mxu0 %v3843_v24 }
 0xa89   :  { %5384 = vmatpush3.msra.mxu1 %v6652_v56  ;;  %5358 = vmatprep.subr.mxu0 %v6634_v58 }
 0xa8a   :  { %5385 = vmatprep.subr.mxu1 %v6660_v19  ;;  %5359 = vmatpush3.msra.mxu0 %v6634_v58 }
 0xa8b   :  { %5386 = vmatpush3.msra.mxu1 %v6660_v19  ;;  %5360 = vmatprep.subr.mxu0 %v6646_v7 }
 0xa8c   :  { %5387 = vmatprep.subr.mxu1 %v6671_v22  ;;  %5361 = vmatpush3.msra.mxu0 %v6646_v7 }
 0xa8d   :  { %5388 = vmatpush3.msra.mxu1 %v6671_v22  ;;  %5362 = vmatprep.subr.mxu0 %v6658_v51 }
 0xa8e   :  { %5389 = vmatprep.subr.mxu1 %v6684_v32  ;;  %5363 = vmatpush3.msra.mxu0 %v6658_v51 }
 0xa8f   :  { %5390 = vmatpush3.msra.mxu1 %v6684_v32  ;;  %5364 = vmatprep.subr.mxu0 %v6675_v20 }
 0xa90   :  { %5392 = vmatmul.mubr.f32.vlgmr.msra.gmra.mxu1 %v6711_v23  ;;  %5365 = vmatpush3.msra.mxu0 %v6675_v20 }
 0xa91   :  { %5366 = vmatprep.subr.mxu0 %v6679_v18 }
 0xa92   :  { %5367 = vmatpush3.msra.mxu0 %v6679_v18 }
 0xa93   :  { %5368 = vmatprep.subr.mxu0 %v6693_v47 }
 0xa94   :  { %5369 = vmatpush3.msra.mxu0 %v6693_v47  ;;  %v4385_v47 = vld [vmem:[#allocation5 + $0xc0] ss:$0 sm:$0xff] }
 0xa95   :  { %5370 = vmatprep.subr.mxu0 %v6703_v61 }
 0xa96   :  { %5371 = vmatpush3.msra.mxu0 %v6703_v61 }
 0xa97   :  { %5373 = vmatmul.mubr.f32.vlgmr.msra.gmra.mxu0 %v6711_v23 }
 0xb2d   :  { %v5317_v54 = vpop.f32.mrf.mxu1 }
 0xb2f   :  { %v3970_v25 = vpop.f32.mrf.mxu1 }
 0xb35   :  { %v5298_v5 = vpop.f32.mrf.mxu0 }
 0xb36   :  { %v3977_v38 = vadd.f32 %v5317_v54, %v5298_v5 }
 0xb37   :  { %v3849_v57 = vpop.f32.mrf.mxu0 }
 0xb38   :  { %v3971_v44 = vadd.f32 %v3970_v25, %v3849_v57 }
 0xb3e   :  { %v5355_v58 = vpop.f32.mrf.mxu1 }
 0xb40   :  { %v4152_v56 = vpop.f32.mrf.mxu1 }
 0xb46   :  { %v5336_v0 = vpop.f32.mrf.mxu0 }
 0xb47   :  { %v4072_v7 = vadd.f32 %v5336_v0, %v3977_v38 }
 0xb48   :  { %v4064_v6 = vpop.f32.mrf.mxu0 }
 0xb49   :  { %v4065_v36 = vadd.f32 %v4064_v6, %v3971_v44  ;;  %v4161_v51 = vadd.f32 %v5355_v58, %v4072_v7 }
 0xb4b   :  { %v4153_v22 = vadd.f32 %v4152_v56, %v4065_v36 }
 0xb50   :  { %v5393_v19 = vpop.f32.mrf.mxu1 }
 0xb52   :  { %v4340_v32 = vpop.f32.mrf.mxu1 }
 0xb57   :  { %v5374_v12 = vpop.f32.mrf.mxu0 }
 0xb58   :  { %v4262_v42 = vadd.f32 %v5374_v12, %v4161_v51 }
 0xb59   :  { %v4255_v20 = vpop.f32.mrf.mxu0 }
 0xb5a   :  { %v4347_v18 = vadd.f32 %v5393_v19, %v4262_v42  ;;  %v4256_v26 = vadd.f32 %v4255_v20, %v4153_v22 }
 0xb5c   :  { %v4351_v46 = vadd.f32 %v4347_v18, %v6508_v40  ;;  %v4341_v61 = vadd.f32 %v4340_v32, %v4256_v26 }
 0xb5e   :  { %v4357_v15 = vadd.f32 %v4385_v47, %v4351_v46  ;;  %v4350_v34 = vadd.f32 %v4341_v61, %v6512_v60 }
 0xb60   :  { %4359 = vst.msk [vmem:[#allocation7 + $0x8] sm:$0xff] %vm98_vm0, %v4357_v15  ;;  %v4356_v3 = vadd.f32 %v4385_v47, %v4350_v34 }
 0xb62   :  { %4358 = vst.msk [vmem:[#allocation7] sm:$0xff] %vm98_vm0, %v4356_v3 }
 0xb63   :  { %5510 = shalt.err (!%p5507_p0)
}
 0xb64   :  { %4371 = dma.vmem_to_hbm [thread:$0]  %s4366_s6, 256, %s6793_s3, [#allocation4], %s5526_s15, %s5526_s15, %s5527_s16  }
 0xb65   :  { %5523 = dma.done.wait [#allocation4], 256  }
 0xb66   :  { %5524 = vsyncadd [#allocation4], 4294967040 }
 0xb67   :  { %4375 = vsyncpa [#allocation3], 1 }
 0xb68   :  { %4376 = vsyncpa [#allocation6], 1 }
 0xb69   :  { %4377 = vsyncpa [#allocation4], 1 }

</bundles_post_ra>
